<compile_context>
chip_gen: v5e
topology: v5e:2x2
jax: 0.10.0
libtpu: 0.0.40
codegen_flags: <defaults>
</compile_context>

<pallas_src>
import functools

import jax
import jax.numpy as jnp
from jax.experimental import pallas as pl
from jax.experimental.pallas import tpu as pltpu

LANE = 128  # lane-dense output width (multiple of the 128-lane vreg)


# ----------------------------------------------------------------------------
# Pallas kernels
# ----------------------------------------------------------------------------
def _linear_kernel(x_ref, w_ref, b_ref, o_ref, *, act):
    """act(X @ W + b).  MXU fed bf16, f32 accumulation, f32 epilogue."""
    x = x_ref[...].astype(jnp.bfloat16)
    y = jnp.dot(x, w_ref[...], preferred_element_type=jnp.float32)
    y = y + b_ref[...]
    if act == "relu":
        y = jnp.maximum(y, 0.0)
    o_ref[...] = y.astype(o_ref.dtype)


def _voxel_kernel(aux_ref, f8_ref, f16_ref, f32_ref,
                  wl8_ref, wl16_ref, wl32_ref, bl_ref,
                  wh_ref, bh_ref, o_ref,
                  *, n_vox, hw8, hw16, hw32, sig_col):
    """Fused voxel path for one batch element.

    gather(f8,f16,f32) -> lifting linear + ReLU + visibility mask ->
    [cls | reg | vox(sigmoid) | sdf | 0-pad] written as one lane-dense
    (n_vox, 128) slab.
    """
    aux = aux_ref[...]                                   # (n_vox, 8) int32
    vis = (aux[:, 3:4] > 0).astype(jnp.float32)          # (n_vox, 1)

    def gather(idx, feat_ref, hw):
        feat = feat_ref[...]                             # (hw, C) bf16
        if hw == 1:                                      # single source pixel
            return jnp.broadcast_to(feat, (n_vox, feat.shape[-1])).astype(jnp.float32)
        cols = jax.lax.broadcasted_iota(jnp.int32, (n_vox, hw), 1)
        onehot = jnp.where(cols == idx, 1.0, 0.0).astype(jnp.bfloat16)
        return jnp.dot(onehot, feat, preferred_element_type=jnp.float32)

    g8 = gather(aux[:, 0:1], f8_ref, hw8)                # (n_vox, c8)
    g16 = gather(aux[:, 1:2], f16_ref, hw16)             # (n_vox, c16)
    g32 = gather(aux[:, 2:3], f32_ref, hw32)             # (n_vox, c32)

    # lifting linear (split along its input dim -> no in-kernel concat) + ReLU + mask
    lift = (jnp.dot(g8.astype(jnp.bfloat16), wl8_ref[...], preferred_element_type=jnp.float32)
            + jnp.dot(g16.astype(jnp.bfloat16), wl16_ref[...], preferred_element_type=jnp.float32)
            + jnp.dot(g32.astype(jnp.bfloat16), wl32_ref[...], preferred_element_type=jnp.float32)
            + bl_ref[...])
    feat3d = jnp.maximum(lift, 0.0) * vis                # (n_vox, c_feat) f32

    # all four heads as a single lane-dense matmul
    heads = jnp.dot(feat3d.astype(jnp.bfloat16), wh_ref[...],
                    preferred_element_type=jnp.float32) + bh_ref[...]
    col = jax.lax.broadcasted_iota(jnp.int32, heads.shape, 1)
    heads = jnp.where(col == sig_col, jax.nn.sigmoid(heads), heads)  # voxel-occupancy column
    o_ref[...] = heads


# ----------------------------------------------------------------------------
# Pallas wrappers
# ----------------------------------------------------------------------------
def _pick_row_tile(m_pad):
    if m_pad >= 1024:
        return 512                       # large-M case (v6e/v5e sweet spot)
    if m_pad >= 32 and m_pad % 32 == 0:
        return m_pad // 2                # >=16-row tiles, gives v7x's 2nd TC work
    return m_pad


def linear_pallas(x, w, b, *, act="relu", out_dtype=jnp.bfloat16):
    """y = act(x @ w + b); `w`/`b` must be lane-dense (N % 128 == 0)."""
    M, K = x.shape
    Kw, Np = w.shape
    assert K == Kw and Np % LANE == 0
    Mp = pl.cdiv(M, 8) * 8               # pad rows to the f32 sublane only
    if Mp != M:
        x = jnp.pad(x, ((0, Mp - M), (0, 0)))
    tm = _pick_row_tile(Mp)
    out = pl.pallas_call(
        functools.partial(_linear_kernel, act=act),
        out_shape=jax.ShapeDtypeStruct((Mp, Np), out_dtype),
        grid=(Mp // tm,),
        in_specs=[
            pl.BlockSpec((tm, K), lambda i: (i, 0)),
            pl.BlockSpec((K, Np), lambda i: (0, 0)),
            pl.BlockSpec((1, Np), lambda i: (0, 0)),
        ],
        out_specs=pl.BlockSpec((tm, Np), lambda i: (i, 0)),
        compiler_params=pltpu.CompilerParams(dimension_semantics=("parallel",)),
    )(x, w, b)
    return out[:M]


def fused_voxel_pallas(aux, f8, f16, f32f, wl8, wl16, wl32, bl, wh, bh, *, sig_col):
    """One pallas_call per forward for the whole voxel path; grid = (B,)."""
    B, n_vox, _ = aux.shape
    hw8, c8 = f8.shape[1], f8.shape[2]
    hw16, c16 = f16.shape[1], f16.shape[2]
    hw32, c32 = f32f.shape[1], f32f.shape[2]
    c_feat = wl8.shape[1]
    n_out = wh.shape[1]
    kern = functools.partial(_voxel_kernel, n_vox=n_vox,
                             hw8=hw8, hw16=hw16, hw32=hw32, sig_col=sig_col)
    return pl.pallas_call(
        kern,
        out_shape=jax.ShapeDtypeStruct((B, n_vox, n_out), jnp.float32),
        grid=(B,),
        in_specs=[
            pl.BlockSpec((None, n_vox, 8), lambda b: (b, 0, 0)),     # packed idx/vis
            pl.BlockSpec((None, hw8, c8), lambda b: (b, 0, 0)),      # f8  (VMEM resident)
            pl.BlockSpec((None, hw16, c16), lambda b: (b, 0, 0)),    # f16
            pl.BlockSpec((None, hw32, c32), lambda b: (b, 0, 0)),    # f32
            pl.BlockSpec((c8, c_feat), lambda b: (0, 0)),            # lifting weights
            pl.BlockSpec((c16, c_feat), lambda b: (0, 0)),
            pl.BlockSpec((c32, c_feat), lambda b: (0, 0)),
            pl.BlockSpec((1, c_feat), lambda b: (0, 0)),             # lifting bias
            pl.BlockSpec((c_feat, n_out), lambda b: (0, 0)),         # fused head weights
            pl.BlockSpec((1, n_out), lambda b: (0, 0)),              # fused head bias
        ],
        out_specs=pl.BlockSpec((None, n_vox, n_out), lambda b: (b, 0, 0)),
        compiler_params=pltpu.CompilerParams(dimension_semantics=("parallel",)),
    )(aux, f8, f16, f32f, wl8, wl16, wl32, bl, wh, bh)


# ----------------------------------------------------------------------------
# Host-side glue (layout plumbing, parameter init, projection)
# ----------------------------------------------------------------------------
def space_to_depth(x, p):
    B, H, W, C = x.shape
    x = x.reshape(B, H // p, p, W // p, p, C)
    x = x.transpose(0, 1, 3, 2, 4, 5)
    return x.reshape(B, H // p, W // p, p * p * C)


class JointDetRecon:
    """JAX / Pallas re-implementation of the PyTorch JointDetRecon forward pass."""

    def __init__(self, key, *, img_res=(32, 32), grid_dims=(4, 4, 4),
                 voxel_size=0.25, c8=8, c16=16, c32=32, c_feat=32,
                 n_class=2, n_reg=7, c_sdf=16):
        self.img_h, self.img_w = img_res
        self.grid_dims = grid_dims
        self.c8, self.c16, self.c32 = c8, c16, c32
        self.c_feat, self.n_class, self.n_reg, self.c_sdf = c_feat, n_class, n_reg, c_sdf

        # make_grid equivalent: regular voxel grid centred at the origin
        nx, ny, nz = grid_dims
        cx = (jnp.arange(nx, dtype=jnp.float32) - (nx - 1) / 2.0) * voxel_size
        cy = (jnp.arange(ny, dtype=jnp.float32) - (ny - 1) / 2.0) * voxel_size
        cz = (jnp.arange(nz, dtype=jnp.float32) - (nz - 1) / 2.0) * voxel_size
        gx, gy, gz = jnp.meshgrid(cx, cy, cz, indexing="ij")
        grid_pos = jnp.stack([gx.ravel(), gy.ravel(), gz.ravel()], axis=-1)   # [N, 3]
        self.n_vox = grid_pos.shape[0]
        self.grid_hom = jnp.concatenate(
            [grid_pos, jnp.ones((self.n_vox, 1), jnp.float32)], axis=-1)      # [N, 4]

        self._init_params(key)

    # -- deterministic parameter init (weights pre-padded / pre-cast once) ----
    def _init_params(self, key):
        c8, c16, c32, c_feat = self.c8, self.c16, self.c32, self.c_feat

        def lin(k, fan_in, fan_out):
            kw, kb = jax.random.split(k)
            w = jax.random.normal(kw, (fan_in, fan_out), jnp.float32) / jnp.sqrt(float(fan_in))
            b = 0.01 * jax.random.normal(kb, (fan_out,), jnp.float32)
            return w, b

        def pad_lane(w, b):  # zero-pad output columns up to 128 lanes, bf16 weights
            kin, n = w.shape
            wp = jnp.zeros((kin, LANE), jnp.float32).at[:, :n].set(w).astype(jnp.bfloat16)
            bp = jnp.zeros((1, LANE), jnp.float32).at[:, :n].set(b)
            return wp, bp

        ks = jax.random.split(key, 8)
        p = {}
        p["w8"], p["b8"] = pad_lane(*lin(ks[0], 8 * 8 * 3, c8))
        p["w16"], p["b16"] = pad_lane(*lin(ks[1], 2 * 2 * c8, c16))
        p["w32"], p["b32"] = pad_lane(*lin(ks[2], 2 * 2 * c16, c32))

        wl, bl = lin(ks[3], c8 + c16 + c32, c_feat)
        p["wl8"] = wl[:c8].astype(jnp.bfloat16)
        p["wl16"] = wl[c8:c8 + c16].astype(jnp.bfloat16)
        p["wl32"] = wl[c8 + c16:].astype(jnp.bfloat16)
        p["bl"] = bl.reshape(1, c_feat)

        w_cls, b_cls = lin(ks[4], c_feat, self.n_class)
        w_reg, b_reg = lin(ks[5], c_feat, self.n_reg)
        w_vox, b_vox = lin(ks[6], c_feat, 1)
        w_sdf, b_sdf = lin(ks[7], c_feat, self.c_sdf)
        wh = jnp.concatenate([w_cls, w_reg, w_vox, w_sdf], axis=1)   # [c_feat, 26]
        bh = jnp.concatenate([b_cls, b_reg, b_vox, b_sdf])
        p["wh"], p["bh"] = pad_lane(wh, bh)                          # -> [c_feat, 128]
        self.params = p

    # -- backbone (stand-in for resnet34): stride 8 / 16 / 32 feature pyramid --
    def _backbone(self, images_nhwc):
        p = self.params
        B, H, W, _ = images_nhwc.shape
        x8 = space_to_depth(images_nhwc, 8)
        f8 = linear_pallas(x8.reshape(-1, x8.shape[-1]), p["w8"], p["b8"])[:, :self.c8]
        f8 = f8.reshape(B, H // 8, W // 8, self.c8)
        x16 = space_to_depth(f8, 2)
        f16 = linear_pallas(x16.reshape(-1, x16.shape[-1]), p["w16"], p["b16"])[:, :self.c16]
        f16 = f16.reshape(B, H // 16, W // 16, self.c16)
        x32 = space_to_depth(f16, 2)
        f32f = linear_pallas(x32.reshape(-1, x32.shape[-1]), p["w32"], p["b32"])[:, :self.c32]
        f32f = f32f.reshape(B, H // 32, W // 32, self.c32)
        return f8, f16, f32f

    # -- grid projection + nearest-neighbour indices + visibility (plain JAX) --
    def _project(self, K, RT):
        P = jnp.einsum("bij,bjk->bik", K, RT)                 # [B, 3, 4]
        cam = jnp.einsum("nk,bjk->bnj", self.grid_hom, P)     # [B, N, 3]
        z = cam[..., 2:3]
        inv_z = 1.0 / jnp.maximum(z, 1e-6)
        u = cam[..., 0:1] * inv_z
        v = cam[..., 1:2] * inv_z
        vis_b = ((z > 1e-3)
                 & (u >= 0.0) & (u <= self.img_w - 1.0)
                 & (v >= 0.0) & (v <= self.img_h - 1.0))      # [B, N, 1]

        def nn_idx(stride):
            hs, ws = self.img_h // stride, self.img_w // stride
            us = jnp.clip(jnp.floor(u[..., 0] / stride), 0, ws - 1).astype(jnp.int32)
            vs = jnp.clip(jnp.floor(v[..., 0] / stride), 0, hs - 1).astype(jnp.int32)
            return vs * ws + us                               # [B, N]

        aux = jnp.stack([nn_idx(8), nn_idx(16), nn_idx(32),
                         vis_b[..., 0].astype(jnp.int32)], axis=-1)   # [B, N, 4]
        aux = jnp.pad(aux, ((0, 0), (0, 0), (0, 4)))                  # [B, N, 8]
        return aux, vis_b.astype(jnp.float32)

    # -- full forward pass ------------------------------------------------------
    def forward(self, K, RT, images):
        p = self.params
        B = images.shape[0]
        images_nhwc = jnp.transpose(images, (0, 2, 3, 1))     # NCHW -> NHWC
        f8, f16, f32f = self._backbone(images_nhwc)
        aux, visible = self._project(K, RT)

        hw8 = f8.shape[1] * f8.shape[2]
        hw16 = f16.shape[1] * f16.shape[2]
        hw32 = f32f.shape[1] * f32f.shape[2]
        out = fused_voxel_pallas(
            aux,
            f8.reshape(B, hw8, self.c8),
            f16.reshape(B, hw16, self.c16),
            f32f.reshape(B, hw32, self.c32),
            p["wl8"], p["wl16"], p["wl32"], p["bl"], p["wh"], p["bh"],
            sig_col=self.n_class + self.n_reg)                # [B, n_vox, 128]

        nx, ny, nz = self.grid_dims
        c0 = 0
        cls = out[:, :, c0:c0 + self.n_class]; c0 += self.n_class
        reg = out[:, :, c0:c0 + self.n_reg]; c0 += self.n_reg
        vox = out[:, :, c0:c0 + 1]; c0 += 1
        sdf = out[:, :, c0:c0 + self.c_sdf]
        return {
            "predict_class": cls.reshape(B, nx, ny, nz, self.n_class),
            "predict_regression": reg.reshape(B, nx, ny, nz, self.n_reg),
            "predict_voxel": vox.reshape(B, nx, ny, nz, 1),
            "predict_sdf_feat": sdf.reshape(B, nx, ny, nz, self.c_sdf),
            "visible": visible,
        }


# ----------------------------------------------------------------------------
if __name__ == "__main__":
    B, H, W = 2, 32, 32
    key = jax.random.PRNGKey(0)
    k_img, k_par = jax.random.split(key)

    images = jax.random.normal(k_img, (B, 3, H, W), jnp.float32)   # NCHW
    f = 32.0
    K = jnp.tile(
        jnp.array([[f, 0.0, 16.0], [0.0, f, 16.0], [0.0, 0.0, 1.0]], jnp.float32)[None],
        (B, 1, 1))
    RT = jnp.tile(
        jnp.array([[1.0, 0.0, 0.0, 0.0],
                   [0.0, 1.0, 0.0, 0.0],
                   [0.0, 0.0, 1.0, 2.5]], jnp.float32)[None],
        (B, 1, 1))

    model = JointDetRecon(k_par, img_res=(H, W), grid_dims=(4, 4, 4), voxel_size=0.25)
    fwd = jax.jit(model.forward)
    out = fwd(K, RT, images)
    jax.block_until_ready(out)

    assert out["predict_class"].shape == (B, 4, 4, 4, 2)
    assert out["predict_regression"].shape == (B, 4, 4, 4, 7)
    assert out["predict_voxel"].shape == (B, 4, 4, 4, 1)
    assert out["predict_sdf_feat"].shape == (B, 4, 4, 4, 16)
    assert out["visible"].shape == (B, 64, 1)
    print("KERNEL_OK")
</pallas_src>

<mosaic_0001>
module attributes {stable_mosaic.version = 11 : i64} {
  func.func @_linear_kernel(%arg0: i32, %arg1: memref<16x192xf32, #tpu.memory_space<vmem>>, %arg2: memref<192x128xbf16, #tpu.memory_space<vmem>>, %arg3: memref<1x128xf32, #tpu.memory_space<vmem>>, %arg4: memref<16x128xbf16, #tpu.memory_space<vmem>>) attributes {dimension_semantics = [#tpu.dimension_semantics<parallel>], iteration_bounds = array<i64: 2>, scalar_prefetch = 0 : i64, scratch_operands = 0 : i64, tpu.core_type = #tpu.core_type<tc>, window_params = [{transform_indices = @transform_0, window_bounds = array<i64: 16, 192>}, {pipeline_mode = #tpu.pipeline_mode<synchronous>, transform_indices = @transform_1, window_bounds = array<i64: 192, 128>}, {pipeline_mode = #tpu.pipeline_mode<synchronous>, transform_indices = @transform_2, window_bounds = array<i64: 1, 128>}, {transform_indices = @transform_3, window_bounds = array<i64: 16, 128>}]} {
    %c0 = arith.constant 0 : index
    %c0_0 = arith.constant 0 : index
    %0 = vector.load %arg1[%c0, %c0_0] : memref<16x192xf32, #tpu.memory_space<vmem>>, vector<16x192xf32>
    %1 = arith.truncf %0 : vector<16x192xf32> to vector<16x192xbf16>
    %c0_1 = arith.constant 0 : index
    %c0_2 = arith.constant 0 : index
    %2 = vector.load %arg2[%c0_1, %c0_2] : memref<192x128xbf16, #tpu.memory_space<vmem>>, vector<192x128xbf16>
    %cst = arith.constant dense<0.000000e+00> : vector<16x128xf32>
    %3 = tpu.matmul %1, %2, %cst {dimension_numbers = #tpu.dot_dimension_numbers<[1], [0], [0], [1], [0, 0, 1, 1], [], []>} : vector<16x192xbf16>, vector<192x128xbf16>, vector<16x128xf32> -> vector<16x128xf32>
    %c0_3 = arith.constant 0 : index
    %c0_4 = arith.constant 0 : index
    %4 = vector.load %arg3[%c0_3, %c0_4] : memref<1x128xf32, #tpu.memory_space<vmem>>, vector<1x128xf32>
    %5 = vector.broadcast %4 : vector<1x128xf32> to vector<16x128xf32>
    %6 = arith.addf %3, %5 : vector<16x128xf32>
    %cst_5 = arith.constant 0.000000e+00 : f32
    %7 = vector.broadcast %cst_5 : f32 to vector<16x128xf32>
    %8 = arith.maximumf %6, %7 : vector<16x128xf32>
    %9 = arith.truncf %8 : vector<16x128xf32> to vector<16x128xbf16>
    %c0_6 = arith.constant 0 : index
    %c0_7 = arith.constant 0 : index
    %10 = vector.load %arg4[%c0_6, %c0_7] : memref<16x128xbf16, #tpu.memory_space<vmem>>, vector<16x128xbf16>
    tpu.vector_store %arg4[%c0_6, %c0_7], %9 {strides = array<i32>} : memref<16x128xbf16, #tpu.memory_space<vmem>>, vector<16x128xbf16>,
    return
  }
  func.func @transform_0(%arg0: i32) -> (i32, i32) {
    %c0_i32 = arith.constant 0 : i32
    %c0_i32_0 = arith.constant 0 : i32
    return %arg0, %c0_i32 : i32, i32
  }
  func.func @transform_1(%arg0: i32) -> (i32, i32) {
    %c0_i32 = arith.constant 0 : i32
    %c0_i32_0 = arith.constant 0 : i32
    %c0_i32_1 = arith.constant 0 : i32
    return %c0_i32, %c0_i32_0 : i32, i32
  }
  func.func @transform_2(%arg0: i32) -> (i32, i32) {
    %c0_i32 = arith.constant 0 : i32
    %c0_i32_0 = arith.constant 0 : i32
    %c0_i32_1 = arith.constant 0 : i32
    return %c0_i32, %c0_i32_0 : i32, i32
  }
  func.func @transform_3(%arg0: i32) -> (i32, i32) {
    %c0_i32 = arith.constant 0 : i32
    %c0_i32_0 = arith.constant 0 : i32
    return %arg0, %c0_i32 : i32, i32
  }
}

module attributes {stable_mosaic.version = 11 : i64} {
  func.func @_linear_kernel(%arg0: i32, %arg1: memref<8x32xbf16, #tpu.memory_space<vmem>>, %arg2: memref<32x128xbf16, #tpu.memory_space<vmem>>, %arg3: memref<1x128xf32, #tpu.memory_space<vmem>>, %arg4: memref<8x128xbf16, #tpu.memory_space<vmem>>) attributes {dimension_semantics = [#tpu.dimension_semantics<parallel>], iteration_bounds = array<i64: 1>, scalar_prefetch = 0 : i64, scratch_operands = 0 : i64, tpu.core_type = #tpu.core_type<tc>, window_params = [{transform_indices = @transform_0, window_bounds = array<i64: 8, 32>}, {pipeline_mode = #tpu.pipeline_mode<synchronous>, transform_indices = @transform_1, window_bounds = array<i64: 32, 128>}, {pipeline_mode = #tpu.pipeline_mode<synchronous>, transform_indices = @transform_2, window_bounds = array<i64: 1, 128>}, {transform_indices = @transform_3, window_bounds = array<i64: 8, 128>}]} {
    %c0 = arith.constant 0 : index
    %c0_0 = arith.constant 0 : index
    %0 = vector.load %arg1[%c0, %c0_0] : memref<8x32xbf16, #tpu.memory_space<vmem>>, vector<8x32xbf16>
    %c0_1 = arith.constant 0 : index
    %c0_2 = arith.constant 0 : index
    %1 = vector.load %arg2[%c0_1, %c0_2] : memref<32x128xbf16, #tpu.memory_space<vmem>>, vector<32x128xbf16>
    %cst = arith.constant dense<0.000000e+00> : vector<8x128xf32>
    %2 = tpu.matmul %0, %1, %cst {dimension_numbers = #tpu.dot_dimension_numbers<[1], [0], [0], [1], [0, 0, 1, 1], [], []>} : vector<8x32xbf16>, vector<32x128xbf16>, vector<8x128xf32> -> vector<8x128xf32>
    %c0_3 = arith.constant 0 : index
    %c0_4 = arith.constant 0 : index
    %3 = vector.load %arg3[%c0_3, %c0_4] : memref<1x128xf32, #tpu.memory_space<vmem>>, vector<1x128xf32>
    %4 = vector.broadcast %3 : vector<1x128xf32> to vector<8x128xf32>
    %5 = arith.addf %2, %4 : vector<8x128xf32>
    %cst_5 = arith.constant 0.000000e+00 : f32
    %6 = vector.broadcast %cst_5 : f32 to vector<8x128xf32>
    %7 = arith.maximumf %5, %6 : vector<8x128xf32>
    %8 = arith.truncf %7 : vector<8x128xf32> to vector<8x128xbf16>
    %c0_6 = arith.constant 0 : index
    %c0_7 = arith.constant 0 : index
    %9 = vector.load %arg4[%c0_6, %c0_7] : memref<8x128xbf16, #tpu.memory_space<vmem>>, vector<8x128xbf16>
    tpu.vector_store %arg4[%c0_6, %c0_7], %8 {strides = array<i32>} : memref<8x128xbf16, #tpu.memory_space<vmem>>, vector<8x128xbf16>,
    return
  }
  func.func @transform_0(%arg0: i32) -> (i32, i32) {
    %c0_i32 = arith.constant 0 : i32
    %c0_i32_0 = arith.constant 0 : i32
    return %arg0, %c0_i32 : i32, i32
  }
  func.func @transform_1(%arg0: i32) -> (i32, i32) {
    %c0_i32 = arith.constant 0 : i32
    %c0_i32_0 = arith.constant 0 : i32
    %c0_i32_1 = arith.constant 0 : i32
    return %c0_i32, %c0_i32_0 : i32, i32
  }
  func.func @transform_2(%arg0: i32) -> (i32, i32) {
    %c0_i32 = arith.constant 0 : i32
    %c0_i32_0 = arith.constant 0 : i32
    %c0_i32_1 = arith.constant 0 : i32
    return %c0_i32, %c0_i32_0 : i32, i32
  }
  func.func @transform_3(%arg0: i32) -> (i32, i32) {
    %c0_i32 = arith.constant 0 : i32
    %c0_i32_0 = arith.constant 0 : i32
    return %arg0, %c0_i32 : i32, i32
  }
}

module attributes {stable_mosaic.version = 11 : i64} {
  func.func @_linear_kernel(%arg0: i32, %arg1: memref<8x64xbf16, #tpu.memory_space<vmem>>, %arg2: memref<64x128xbf16, #tpu.memory_space<vmem>>, %arg3: memref<1x128xf32, #tpu.memory_space<vmem>>, %arg4: memref<8x128xbf16, #tpu.memory_space<vmem>>) attributes {dimension_semantics = [#tpu.dimension_semantics<parallel>], iteration_bounds = array<i64: 1>, scalar_prefetch = 0 : i64, scratch_operands = 0 : i64, tpu.core_type = #tpu.core_type<tc>, window_params = [{transform_indices = @transform_0, window_bounds = array<i64: 8, 64>}, {pipeline_mode = #tpu.pipeline_mode<synchronous>, transform_indices = @transform_1, window_bounds = array<i64: 64, 128>}, {pipeline_mode = #tpu.pipeline_mode<synchronous>, transform_indices = @transform_2, window_bounds = array<i64: 1, 128>}, {transform_indices = @transform_3, window_bounds = array<i64: 8, 128>}]} {
    %c0 = arith.constant 0 : index
    %c0_0 = arith.constant 0 : index
    %0 = vector.load %arg1[%c0, %c0_0] : memref<8x64xbf16, #tpu.memory_space<vmem>>, vector<8x64xbf16>
    %c0_1 = arith.constant 0 : index
    %c0_2 = arith.constant 0 : index
    %1 = vector.load %arg2[%c0_1, %c0_2] : memref<64x128xbf16, #tpu.memory_space<vmem>>, vector<64x128xbf16>
    %cst = arith.constant dense<0.000000e+00> : vector<8x128xf32>
    %2 = tpu.matmul %0, %1, %cst {dimension_numbers = #tpu.dot_dimension_numbers<[1], [0], [0], [1], [0, 0, 1, 1], [], []>} : vector<8x64xbf16>, vector<64x128xbf16>, vector<8x128xf32> -> vector<8x128xf32>
    %c0_3 = arith.constant 0 : index
    %c0_4 = arith.constant 0 : index
    %3 = vector.load %arg3[%c0_3, %c0_4] : memref<1x128xf32, #tpu.memory_space<vmem>>, vector<1x128xf32>
    %4 = vector.broadcast %3 : vector<1x128xf32> to vector<8x128xf32>
    %5 = arith.addf %2, %4 : vector<8x128xf32>
    %cst_5 = arith.constant 0.000000e+00 : f32
    %6 = vector.broadcast %cst_5 : f32 to vector<8x128xf32>
    %7 = arith.maximumf %5, %6 : vector<8x128xf32>
    %8 = arith.truncf %7 : vector<8x128xf32> to vector<8x128xbf16>
    %c0_6 = arith.constant 0 : index
    %c0_7 = arith.constant 0 : index
    %9 = vector.load %arg4[%c0_6, %c0_7] : memref<8x128xbf16, #tpu.memory_space<vmem>>, vector<8x128xbf16>
    tpu.vector_store %arg4[%c0_6, %c0_7], %8 {strides = array<i32>} : memref<8x128xbf16, #tpu.memory_space<vmem>>, vector<8x128xbf16>,
    return
  }
  func.func @transform_0(%arg0: i32) -> (i32, i32) {
    %c0_i32 = arith.constant 0 : i32
    %c0_i32_0 = arith.constant 0 : i32
    return %arg0, %c0_i32 : i32, i32
  }
  func.func @transform_1(%arg0: i32) -> (i32, i32) {
    %c0_i32 = arith.constant 0 : i32
    %c0_i32_0 = arith.constant 0 : i32
    %c0_i32_1 = arith.constant 0 : i32
    return %c0_i32, %c0_i32_0 : i32, i32
  }
  func.func @transform_2(%arg0: i32) -> (i32, i32) {
    %c0_i32 = arith.constant 0 : i32
    %c0_i32_0 = arith.constant 0 : i32
    %c0_i32_1 = arith.constant 0 : i32
    return %c0_i32, %c0_i32_0 : i32, i32
  }
  func.func @transform_3(%arg0: i32) -> (i32, i32) {
    %c0_i32 = arith.constant 0 : i32
    %c0_i32_0 = arith.constant 0 : i32
    return %arg0, %c0_i32 : i32, i32
  }
}

module attributes {stable_mosaic.version = 11 : i64} {
  func.func @_voxel_kernel(%arg0: i32, %arg1: memref<1x64x8xi32, #tpu.memory_space<vmem>>, %arg2: memref<1x16x8xbf16, #tpu.memory_space<vmem>>, %arg3: memref<1x4x16xbf16, #tpu.memory_space<vmem>>, %arg4: memref<1x1x32xbf16, #tpu.memory_space<vmem>>, %arg5: memref<8x32xbf16, #tpu.memory_space<vmem>>, %arg6: memref<16x32xbf16, #tpu.memory_space<vmem>>, %arg7: memref<32x32xbf16, #tpu.memory_space<vmem>>, %arg8: memref<1x32xf32, #tpu.memory_space<vmem>>, %arg9: memref<32x128xbf16, #tpu.memory_space<vmem>>, %arg10: memref<1x128xf32, #tpu.memory_space<vmem>>, %arg11: memref<1x64x128xf32, #tpu.memory_space<vmem>>) attributes {dimension_semantics = [#tpu.dimension_semantics<parallel>], iteration_bounds = array<i64: 2>, scalar_prefetch = 0 : i64, scratch_operands = 0 : i64, tpu.core_type = #tpu.core_type<tc>, window_params = [{transform_indices = @transform_0, window_bounds = array<i64: 1, 64, 8>}, {transform_indices = @transform_1, window_bounds = array<i64: 1, 16, 8>}, {transform_indices = @transform_2, window_bounds = array<i64: 1, 4, 16>}, {transform_indices = @transform_3, window_bounds = array<i64: 1, 1, 32>}, {pipeline_mode = #tpu.pipeline_mode<synchronous>, transform_indices = @transform_4, window_bounds = array<i64: 8, 32>}, {pipeline_mode = #tpu.pipeline_mode<synchronous>, transform_indices = @transform_5, window_bounds = array<i64: 16, 32>}, {pipeline_mode = #tpu.pipeline_mode<synchronous>, transform_indices = @transform_6, window_bounds = array<i64: 32, 32>}, {pipeline_mode = #tpu.pipeline_mode<synchronous>, transform_indices = @transform_7, window_bounds = array<i64: 1, 32>}, {pipeline_mode = #tpu.pipeline_mode<synchronous>, transform_indices = @transform_8, window_bounds = array<i64: 32, 128>}, {pipeline_mode = #tpu.pipeline_mode<synchronous>, transform_indices = @transform_9, window_bounds = array<i64: 1, 128>}, {transform_indices = @transform_10, window_bounds = array<i64: 1, 64, 128>}]} {
    %c0 = arith.constant 0 : index
    %c0_0 = arith.constant 0 : index
    %c0_1 = arith.constant 0 : index
    %0 = vector.load %arg1[%c0, %c0_0, %c0_1] : memref<1x64x8xi32, #tpu.memory_space<vmem>>, vector<1x64x8xi32>
    %1 = vector.shape_cast %0 : vector<1x64x8xi32> to vector<64x8xi32>
    %2 = vector.extract_strided_slice %1 {offsets = [0, 3], sizes = [64, 1], strides = [1, 1]} : vector<64x8xi32> to vector<64x1xi32>
    %c0_i32 = arith.constant 0 : i32
    %3 = vector.broadcast %c0_i32 : i32 to vector<64x1xi32>
    %4 = arith.cmpi sgt, %2, %3 : vector<64x1xi32>
    %5 = arith.extui %4 : vector<64x1xi1> to vector<64x1xi32>
    %6 = arith.sitofp %5 : vector<64x1xi32> to vector<64x1xf32>
    %7 = vector.extract_strided_slice %1 {offsets = [0, 0], sizes = [64, 1], strides = [1, 1]} : vector<64x8xi32> to vector<64x1xi32>
    %c0_2 = arith.constant 0 : index
    %c0_3 = arith.constant 0 : index
    %c0_4 = arith.constant 0 : index
    %8 = vector.load %arg2[%c0_2, %c0_3, %c0_4] : memref<1x16x8xbf16, #tpu.memory_space<vmem>>, vector<1x16x8xbf16>
    %9 = vector.shape_cast %8 : vector<1x16x8xbf16> to vector<16x8xbf16>
    %10 = tpu.iota {dimensions = array<i32: 1>} : vector<64x16xi32>
    %11 = vector.broadcast %7 : vector<64x1xi32> to vector<64x16xi32>
    %12 = arith.cmpi eq, %10, %11 : vector<64x16xi32>
    %cst = arith.constant 1.000000e+00 : f32
    %cst_5 = arith.constant 0.000000e+00 : f32
    %13 = vector.broadcast %cst : f32 to vector<64x16xf32>
    %14 = vector.broadcast %cst_5 : f32 to vector<64x16xf32>
    %15 = arith.select %12, %13, %14 : vector<64x16xi1>, vector<64x16xf32>
    %16 = arith.truncf %15 : vector<64x16xf32> to vector<64x16xbf16>
    %cst_6 = arith.constant dense<0.000000e+00> : vector<64x8xf32>
    %17 = tpu.matmul %16, %9, %cst_6 {dimension_numbers = #tpu.dot_dimension_numbers<[1], [0], [0], [1], [0, 0, 1, 1], [], []>} : vector<64x16xbf16>, vector<16x8xbf16>, vector<64x8xf32> -> vector<64x8xf32>
    %18 = vector.extract_strided_slice %1 {offsets = [0, 1], sizes = [64, 1], strides = [1, 1]} : vector<64x8xi32> to vector<64x1xi32>
    %c0_7 = arith.constant 0 : index
    %c0_8 = arith.constant 0 : index
    %c0_9 = arith.constant 0 : index
    %19 = vector.load %arg3[%c0_7, %c0_8, %c0_9] : memref<1x4x16xbf16, #tpu.memory_space<vmem>>, vector<1x4x16xbf16>
    %20 = vector.shape_cast %19 : vector<1x4x16xbf16> to vector<4x16xbf16>
    %21 = tpu.iota {dimensions = array<i32: 1>} : vector<64x4xi32>
    %22 = vector.broadcast %18 : vector<64x1xi32> to vector<64x4xi32>
    %23 = arith.cmpi eq, %21, %22 : vector<64x4xi32>
    %cst_10 = arith.constant 1.000000e+00 : f32
    %cst_11 = arith.constant 0.000000e+00 : f32
    %24 = vector.broadcast %cst_10 : f32 to vector<64x4xf32>
    %25 = vector.broadcast %cst_11 : f32 to vector<64x4xf32>
    %26 = arith.select %23, %24, %25 : vector<64x4xi1>, vector<64x4xf32>
    %27 = arith.truncf %26 : vector<64x4xf32> to vector<64x4xbf16>
    %cst_12 = arith.constant dense<0.000000e+00> : vector<64x16xf32>
    %28 = tpu.matmul %27, %20, %cst_12 {dimension_numbers = #tpu.dot_dimension_numbers<[1], [0], [0], [1], [0, 0, 1, 1], [], []>} : vector<64x4xbf16>, vector<4x16xbf16>, vector<64x16xf32> -> vector<64x16xf32>
    %c0_13 = arith.constant 0 : index
    %c0_14 = arith.constant 0 : index
    %c0_15 = arith.constant 0 : index
    %29 = vector.load %arg4[%c0_13, %c0_14, %c0_15] : memref<1x1x32xbf16, #tpu.memory_space<vmem>>, vector<1x1x32xbf16>
    %30 = vector.shape_cast %29 : vector<1x1x32xbf16> to vector<1x32xbf16>
    %31 = vector.shape_cast %30 : vector<1x32xbf16> to vector<1x32xbf16>
    %32 = vector.broadcast %31 : vector<1x32xbf16> to vector<64x32xbf16>
    %33 = arith.extf %32 : vector<64x32xbf16> to vector<64x32xf32>
    %34 = arith.truncf %17 : vector<64x8xf32> to vector<64x8xbf16>
    %c0_16 = arith.constant 0 : index
    %c0_17 = arith.constant 0 : index
    %35 = vector.load %arg5[%c0_16, %c0_17] : memref<8x32xbf16, #tpu.memory_space<vmem>>, vector<8x32xbf16>
    %cst_18 = arith.constant dense<0.000000e+00> : vector<64x32xf32>
    %36 = tpu.matmul %34, %35, %cst_18 {dimension_numbers = #tpu.dot_dimension_numbers<[1], [0], [0], [1], [0, 0, 1, 1], [], []>} : vector<64x8xbf16>, vector<8x32xbf16>, vector<64x32xf32> -> vector<64x32xf32>
    %37 = arith.truncf %28 : vector<64x16xf32> to vector<64x16xbf16>
    %c0_19 = arith.constant 0 : index
    %c0_20 = arith.constant 0 : index
    %38 = vector.load %arg6[%c0_19, %c0_20] : memref<16x32xbf16, #tpu.memory_space<vmem>>, vector<16x32xbf16>
    %cst_21 = arith.constant dense<0.000000e+00> : vector<64x32xf32>
    %39 = tpu.matmul %37, %38, %cst_21 {dimension_numbers = #tpu.dot_dimension_numbers<[1], [0], [0], [1], [0, 0, 1, 1], [], []>} : vector<64x16xbf16>, vector<16x32xbf16>, vector<64x32xf32> -> vector<64x32xf32>
    %40 = arith.addf %36, %39 : vector<64x32xf32>
    %41 = arith.truncf %33 : vector<64x32xf32> to vector<64x32xbf16>
    %c0_22 = arith.constant 0 : index
    %c0_23 = arith.constant 0 : index
    %42 = vector.load %arg7[%c0_22, %c0_23] : memref<32x32xbf16, #tpu.memory_space<vmem>>, vector<32x32xbf16>
    %cst_24 = arith.constant dense<0.000000e+00> : vector<64x32xf32>
    %43 = tpu.matmul %41, %42, %cst_24 {dimension_numbers = #tpu.dot_dimension_numbers<[1], [0], [0], [1], [0, 0, 1, 1], [], []>} : vector<64x32xbf16>, vector<32x32xbf16>, vector<64x32xf32> -> vector<64x32xf32>
    %44 = arith.addf %40, %43 : vector<64x32xf32>
    %c0_25 = arith.constant 0 : index
    %c0_26 = arith.constant 0 : index
    %45 = vector.load %arg8[%c0_25, %c0_26] : memref<1x32xf32, #tpu.memory_space<vmem>>, vector<1x32xf32>
    %46 = vector.broadcast %45 : vector<1x32xf32> to vector<64x32xf32>
    %47 = arith.addf %44, %46 : vector<64x32xf32>
    %cst_27 = arith.constant 0.000000e+00 : f32
    %48 = vector.broadcast %cst_27 : f32 to vector<64x32xf32>
    %49 = arith.maximumf %47, %48 : vector<64x32xf32>
    %50 = vector.broadcast %6 : vector<64x1xf32> to vector<64x32xf32>
    %51 = arith.mulf %49, %50 : vector<64x32xf32>
    %52 = arith.truncf %51 : vector<64x32xf32> to vector<64x32xbf16>
    %c0_28 = arith.constant 0 : index
    %c0_29 = arith.constant 0 : index
    %53 = vector.load %arg9[%c0_28, %c0_29] : memref<32x128xbf16, #tpu.memory_space<vmem>>, vector<32x128xbf16>
    %cst_30 = arith.constant dense<0.000000e+00> : vector<64x128xf32>
    %54 = tpu.matmul %52, %53, %cst_30 {dimension_numbers = #tpu.dot_dimension_numbers<[1], [0], [0], [1], [0, 0, 1, 1], [], []>} : vector<64x32xbf16>, vector<32x128xbf16>, vector<64x128xf32> -> vector<64x128xf32>
    %c0_31 = arith.constant 0 : index
    %c0_32 = arith.constant 0 : index
    %55 = vector.load %arg10[%c0_31, %c0_32] : memref<1x128xf32, #tpu.memory_space<vmem>>, vector<1x128xf32>
    %56 = vector.broadcast %55 : vector<1x128xf32> to vector<64x128xf32>
    %57 = arith.addf %54, %56 : vector<64x128xf32>
    %58 = tpu.iota {dimensions = array<i32: 1>} : vector<64x128xi32>
    %c9_i32 = arith.constant 9 : i32
    %59 = vector.broadcast %c9_i32 : i32 to vector<64x128xi32>
    %60 = arith.cmpi eq, %58, %59 : vector<64x128xi32>
    %61 = arith.negf %57 : vector<64x128xf32>
    %62 = math.exp %61 : vector<64x128xf32>
    %cst_33 = arith.constant 1.000000e+00 : f32
    %63 = vector.broadcast %cst_33 : f32 to vector<64x128xf32>
    %64 = arith.addf %63, %62 : vector<64x128xf32>
    %65 = arith.divf %63, %64 : vector<64x128xf32>
    %66 = arith.select %60, %65, %57 : vector<64x128xi1>, vector<64x128xf32>
    %c0_34 = arith.constant 0 : index
    %c0_35 = arith.constant 0 : index
    %c0_36 = arith.constant 0 : index
    %67 = vector.load %arg11[%c0_34, %c0_35, %c0_36] : memref<1x64x128xf32, #tpu.memory_space<vmem>>, vector<1x64x128xf32>
    %68 = vector.shape_cast %67 : vector<1x64x128xf32> to vector<64x128xf32>
    %69 = vector.shape_cast %66 : vector<64x128xf32> to vector<1x64x128xf32>
    tpu.vector_store %arg11[%c0_34, %c0_35, %c0_36], %69 {strides = array<i32>} : memref<1x64x128xf32, #tpu.memory_space<vmem>>, vector<1x64x128xf32>,
    return
  }
  func.func @transform_0(%arg0: i32) -> (i32, i32, i32) {
    %c0_i32 = arith.constant 0 : i32
    %c0_i32_0 = arith.constant 0 : i32
    %c0_i32_1 = arith.constant 0 : i32
    return %arg0, %c0_i32, %c0_i32_0 : i32, i32, i32
  }
  func.func @transform_1(%arg0: i32) -> (i32, i32, i32) {
    %c0_i32 = arith.constant 0 : i32
    %c0_i32_0 = arith.constant 0 : i32
    %c0_i32_1 = arith.constant 0 : i32
    return %arg0, %c0_i32, %c0_i32_0 : i32, i32, i32
  }
  func.func @transform_2(%arg0: i32) -> (i32, i32, i32) {
    %c0_i32 = arith.constant 0 : i32
    %c0_i32_0 = arith.constant 0 : i32
    %c0_i32_1 = arith.constant 0 : i32
    return %arg0, %c0_i32, %c0_i32_0 : i32, i32, i32
  }
  func.func @transform_3(%arg0: i32) -> (i32, i32, i32) {
    %c0_i32 = arith.constant 0 : i32
    %c0_i32_0 = arith.constant 0 : i32
    %c0_i32_1 = arith.constant 0 : i32
    return %arg0, %c0_i32, %c0_i32_0 : i32, i32, i32
  }
  func.func @transform_4(%arg0: i32) -> (i32, i32) {
    %c0_i32 = arith.constant 0 : i32
    %c0_i32_0 = arith.constant 0 : i32
    %c0_i32_1 = arith.constant 0 : i32
    return %c0_i32, %c0_i32_0 : i32, i32
  }
  func.func @transform_5(%arg0: i32) -> (i32, i32) {
    %c0_i32 = arith.constant 0 : i32
    %c0_i32_0 = arith.constant 0 : i32
    %c0_i32_1 = arith.constant 0 : i32
    return %c0_i32, %c0_i32_0 : i32, i32
  }
  func.func @transform_6(%arg0: i32) -> (i32, i32) {
    %c0_i32 = arith.constant 0 : i32
    %c0_i32_0 = arith.constant 0 : i32
    %c0_i32_1 = arith.constant 0 : i32
    return %c0_i32, %c0_i32_0 : i32, i32
  }
  func.func @transform_7(%arg0: i32) -> (i32, i32) {
    %c0_i32 = arith.constant 0 : i32
    %c0_i32_0 = arith.constant 0 : i32
    %c0_i32_1 = arith.constant 0 : i32
    return %c0_i32, %c0_i32_0 : i32, i32
  }
  func.func @transform_8(%arg0: i32) -> (i32, i32) {
    %c0_i32 = arith.constant 0 : i32
    %c0_i32_0 = arith.constant 0 : i32
    %c0_i32_1 = arith.constant 0 : i32
    return %c0_i32, %c0_i32_0 : i32, i32
  }
  func.func @transform_9(%arg0: i32) -> (i32, i32) {
    %c0_i32 = arith.constant 0 : i32
    %c0_i32_0 = arith.constant 0 : i32
    %c0_i32_1 = arith.constant 0 : i32
    return %c0_i32, %c0_i32_0 : i32, i32
  }
  func.func @transform_10(%arg0: i32) -> (i32, i32, i32) {
    %c0_i32 = arith.constant 0 : i32
    %c0_i32_0 = arith.constant 0 : i32
    %c0_i32_1 = arith.constant 0 : i32
    return %arg0, %c0_i32, %c0_i32_0 : i32, i32, i32
  }
}

</mosaic_0001>

<bundles_post_ra>
// kernel: forward.4
= control target key start
LH: loop header
LB: loop body
LE: loop exit
PB: predicated region body
PF: predicated region fallthrough
CT: control target
= control target key end

     0   :  { %s494_s12 = smov 0   ;;  %s554_s0 = inlined_call_operand.vmem [shape: f32[32,192], index: 0, kind: input, shape index: {}]   ;;  %s555_s1 = inlined_call_operand.vmem [shape: bf16[192,128], index: 1, kind: input, shape index: {}]   ;;  %s556_s2 = inlined_call_operand.vmem [shape: f32[1,128], index: 2, kind: input, shape index: {}]   ;;  %s557_s3 = inlined_call_operand.vmem [shape: bf16[32,128], index: 3, kind: output, shape index: {}]  }
   0x1 LB: > { %s378_s13 = sadd.s32 4294967295, %s472_s12   ;;  %p382_p0 = scmp.ge.s32.totalorder %s472_s12, 1  ;;  %s472_s12 = sphi %s494_s12, %s13_s12  }
   0x2   : > { %p139_p1 = scmp.lt.s32.totalorder %s472_s12, 3 }
   0x4   : > { %p140_p2 = pnand %p382_p0, %p139_p1 }
   0x5   : > { %s383_s16 = sshll.u32 (!%p140_p2), %s378_s13, 1 }
   0x6   : > { %143 = sbr.rel (%p140_p2) target bundleno = 186 (0xba), region = 32  ;;  %p165_p3 = scmp.lt.s32.totalorder (!%p140_p2), %s383_s16, 3 }
   0xb   : > { %v447_v0 = vld [vmem:[%s555_s1 + $0x38] sm:$0xff]  ;;  %v446_v2 = vld [vmem:[%s555_s1 + $0x30] sm:$0xff]  ;;  %s559_s16 = smov (!%p165_p3, %s383_s16), 3  ;;  %v445_v4 = vld [vmem:[%s555_s1 + $0x28] sm:$0xff]  ;;  %vm284_vm0 = vcmask 523264  }
   0xc   : > { %v451_v1 = vld [vmem:[%s555_s1 + $0x58] sm:$0xff]  ;;  %288 = vmatpush.bf16.msra.mxu0 %v447_v0  ;;  %v450_v3 = vld [vmem:[%s555_s1 + $0x50] sm:$0xff]  ;;  %s439_s23 = sshll.u32 %s559_s16, 4  ;;  %v449_v5 = vld [vmem:[%s555_s1 + $0x48] sm:$0xff]  ;;  %s387_s20 = sshll.u32 %s559_s16, 2 }
   0xd   : > { %306 = vmatpush.bf16.msra.mxu1 %v451_v1  ;;  %s169_s30 = scalar_lea.vmem %s554_s0, %s439_s23  ;;  %v444_v6 = vld [vmem:[%s555_s1 + $0x20] sm:$0xff]  ;;  %v443_v10 = vld [vmem:[%s555_s1 + $0x18] sm:$0xff]  ;;  %v442_v12 = vld [vmem:[%s555_s1 + $0x10] sm:$0xff]  ;;  %s175_s23 = scalar_lea.vmem %s557_s3, %s387_s20 }
   0xe   : > { %v448_v7 = vld [vmem:[%s555_s1 + $0x40] sm:$0xff]  ;;  %v179_v8 = vld [vmem:[%s169_s30 + $0x8] sm:$0xff]  ;;  %v181_v9 = vld [vmem:[%s169_s30 + $0x18] sm:$0xff] }
   0xf   : > { %v183_v11 = vpack.c.bf16 %v181_v9, %v179_v8  ;;  %v441_v13 = vld [vmem:[%s555_s1 + $0x8] sm:$0xff]  ;;  %v440_v14 = vld [vmem:[%s555_s1] sm:$0xff]  ;;  %v180_v16 = vld [vmem:[%s169_s30 + $0x10] sm:$0xff] }
  0x10   : > { %289 = vmatpush.bf16.msra.mxu0 %v446_v2  ;;  %v178_v15 = vld [vmem:[%s169_s30] sm:$0xff] }
  0x11   : > { %307 = vmatpush.bf16.msra.mxu1 %v450_v3  ;;  %v182_v17 = vpack.c.bf16 %v180_v16, %v178_v15  ;;  %v465_v20 = vld [vmem:[%s556_s2] ss:$0 sm:$0xff] }
  0x14   : > { %290 = vmatpush.bf16.msra.mxu0 %v445_v4 }
  0x15   : > { %308 = vmatpush.bf16.msra.mxu1 %v449_v5 }
  0x18   : > { %291 = vmatpush.bf16.msra.mxu0 %v444_v6 }
  0x19   : > { %309 = vmatpush.bf16.msra.mxu1 %v448_v7 }
  0x1c   : > { %292 = vmatpush.bf16.msra.mxu0 %v443_v10  ;;  %436 = vmatmul.msk.bf16.vlgmr.msra.gmra.mxu1 %vm284_vm0, %v183_v11 }
  0x20   : > { %293 = vmatpush.bf16.msra.mxu0 %v442_v12 }
  0x24   : > { %294 = vmatpush.bf16.msra.mxu0 %v441_v13 }
  0x28   : > { %295 = vmatpush.bf16.msra.mxu0 %v440_v14 }
  0x2b   : > { %296 = vmatmul.bf16.vlgmr.msra.gmra.mxu0 %v182_v17 }
  0x99   : > { %v311_v18 = vpop.f32.mrf.mxu1 }
  0xa1   : > { %v313_v25 = vpop.f32.mrf.mxu1 }
  0xa8   : > { %v297_v19 = vpop.f32.mrf.mxu0 }
  0xa9   : > { %v298_v21 = vadd.f32 %v465_v20, %v297_v19 }
  0xab   : > { %v312_v23 = vadd.f32 %v311_v18, %v298_v21 }
  0xad   : > { %v316_v27 = vmax.f32 %v312_v23, 0.0 }
  0xb0   : > { %v299_v22 = vpop.f32.mrf.mxu0 }
  0xb1   : > { %v300_v24 = vadd.f32 %v465_v20, %v299_v22 }
  0xb3   : > { %v314_v26 = vadd.f32 %v313_v25, %v300_v24 }
  0xb5   : > { %v317_v28 = vmax.f32 %v314_v26, 0.0 }
  0xb7   : > { %v455_v29 = vpack.c.bf16 %v317_v28, %v316_v27 }
  0xb9   : > { %456 = vst [vmem:[%s175_s23] sm:$0xff] %v455_v29  }
  0xba PF: > { %s13_s12 = sadd.s32 1, %s472_s12  }
  0xbb   : > { %p10_p4 = scmp.ge.s32.totalorder %s13_s12, 4  }
  0xbd   :  { %12 = sbr.rel (!%p10_p4) target bundleno = 1 (0x1), region = 62 }

// kernel: forward.5
= control target key start
LH: loop header
LB: loop body
LE: loop exit
PB: predicated region body
PF: predicated region fallthrough
CT: control target
= control target key end

     0   :  { %vm36_vm0 = vcmask 261120   ;;  %s107_s1 = inlined_call_operand.vmem [shape: bf16[32,128], index: 1, kind: input, shape index: {}]   ;;  %s108_s2 = inlined_call_operand.vmem [shape: f32[1,128], index: 2, kind: input, shape index: {}]   ;;  %s109_s0 = inlined_call_operand.vmem [shape: bf16[8,32], index: 0, kind: input, shape index: {}]   ;;  %s110_s3 = inlined_call_operand.vmem [shape: bf16[8,128], index: 3, kind: output, shape index: {}]  }
   0x1   :  { %v70_v0 = vld [vmem:[%s107_s1 + $0x8] sm:$0xff]  ;;  %v69_v1 = vld [vmem:[%s107_s1] sm:$0xff] }
   0x2   :  { %46 = vmatpush.bf16.msra.mxu0 %v70_v0  ;;  %v15_v2 = vld [vmem:[%s109_s0] sm:$0xf] }
   0x3   :  { %v71_v3 = vld [vmem:[%s108_s2] ss:$0 sm:$0xff] }
   0x6   :  { %47 = vmatpush.bf16.msra.mxu0 %v69_v1 }
   0x9   :  { %68 = vmatmul.msk.bf16.vlgmr.msra.gmra.mxu0 %vm36_vm0, %v15_v2 }
  0x86   :  { %v49_v4 = vpop.f32.mrf.mxu0 }
  0x87   :  { %v50_v5 = vadd.f32 %v71_v3, %v49_v4 }
  0x89   :  { %v53_v6 = vmax.f32 %v50_v5, 0.0 }
  0x8b   :  { %v54_v7 = vpack.c.bf16 %v53_v6, %v53_v6 }
  0x8d   :  { %55 = vst [vmem:[%s110_s3] sm:$0xf] %v54_v7 }
  0x8e   :  { %v51_v8 = vpop.f32.mrf.mxu0 }

// kernel: forward.6
= control target key start
LH: loop header
LB: loop body
LE: loop exit
PB: predicated region body
PF: predicated region fallthrough
CT: control target
= control target key end

     0   :  { %vm52_vm0 = vcmask 523264   ;;  %s139_s1 = inlined_call_operand.vmem [shape: bf16[64,128], index: 1, kind: input, shape index: {}]   ;;  %s140_s2 = inlined_call_operand.vmem [shape: f32[1,128], index: 2, kind: input, shape index: {}]   ;;  %s141_s0 = inlined_call_operand.vmem [shape: bf16[8,64], index: 0, kind: input, shape index: {}]   ;;  %s142_s3 = inlined_call_operand.vmem [shape: bf16[8,128], index: 3, kind: output, shape index: {}]  }
   0x1   :  { %v96_v0 = vld [vmem:[%s139_s1 + $0x18] sm:$0xff]  ;;  %v95_v1 = vld [vmem:[%s139_s1 + $0x10] sm:$0xff]  ;;  %v94_v2 = vld [vmem:[%s139_s1 + $0x8] sm:$0xff] }
   0x2   :  { %60 = vmatpush.bf16.msra.mxu0 %v96_v0  ;;  %v93_v3 = vld [vmem:[%s139_s1] sm:$0xff] }
   0x3   :  { %v15_v4 = vld [vmem:[%s141_s0] sm:$0xf] }
   0x4   :  { %v97_v5 = vld [vmem:[%s140_s2] ss:$0 sm:$0xff] }
   0x6   :  { %61 = vmatpush.bf16.msra.mxu0 %v95_v1 }
   0xa   :  { %62 = vmatpush.bf16.msra.mxu0 %v94_v2 }
   0xe   :  { %63 = vmatpush.bf16.msra.mxu0 %v93_v3 }
  0x11   :  { %92 = vmatmul.msk.bf16.vlgmr.msra.gmra.mxu0 %vm52_vm0, %v15_v4 }
  0x8e   :  { %v65_v6 = vpop.f32.mrf.mxu0 }
  0x8f   :  { %v66_v7 = vadd.f32 %v97_v5, %v65_v6 }
  0x91   :  { %v69_v8 = vmax.f32 %v66_v7, 0.0 }
  0x93   :  { %v70_v9 = vpack.c.bf16 %v69_v8, %v69_v8 }
  0x95   :  { %71 = vst [vmem:[%s142_s3] sm:$0xf] %v70_v9 }
  0x96   :  { %v67_v10 = vpop.f32.mrf.mxu0 }

// kernel: forward.7
= control target key start
LH: loop header
LB: loop body
LE: loop exit
PB: predicated region body
PF: predicated region fallthrough
CT: control target
= control target key end

     0   :  { %s1420_s13 = smov 0   ;;  %s1657_s0 = inlined_call_operand.vmem [shape: s32[2,64,8], index: 0, kind: input, shape index: {}]   ;;  %s1658_s1 = inlined_call_operand.vmem [shape: bf16[2,16,8], index: 1, kind: input, shape index: {}]   ;;  %s1659_s2 = inlined_call_operand.vmem [shape: bf16[2,4,16], index: 2, kind: input, shape index: {}]   ;;  %s1660_s3 = inlined_call_operand.vmem [shape: bf16[2,1,32], index: 3, kind: input, shape index: {}]   ;;  %s1661_s4 = inlined_call_operand.vmem [shape: bf16[8,32], index: 4, kind: input, shape index: {}]   ;;  %s1662_s5 = inlined_call_operand.vmem [shape: bf16[16,32], index: 5, kind: input, shape index: {}]   ;;  %s1663_s6 = inlined_call_operand.vmem [shape: bf16[32,32], index: 6, kind: input, shape index: {}]   ;;  %s1664_s7 = inlined_call_operand.vmem [shape: f32[1,32], index: 7, kind: input, shape index: {}]   ;;  %s1665_s8 = inlined_call_operand.vmem [shape: bf16[32,128], index: 8, kind: input, shape index: {}]   ;;  %s1666_s9 = inlined_call_operand.vmem [shape: f32[1,128], index: 9, kind: input, shape index: {}]   ;;  %s1667_s10 = inlined_call_operand.vmem [shape: f32[2,64,128], index: 10, kind: output, shape index: {}]  }
   0x1 LB: > { %s1187_s14 = sadd.s32 4294967295, %s1359_s13   ;;  %p1191_p0 = scmp.ge.s32.totalorder %s1359_s13, 1  ;;  %s1359_s13 = sphi %s1420_s13, %s20_s13  }
   0x2   : > { %p339_p1 = scmp.lt.s32.totalorder %s1359_s13, 3 }
   0x4   : > { %p340_p2 = pnand %p1191_p0, %p339_p1 }
   0x5   : > { %p389_p3 = scmp.lt.s32.totalorder (!%p340_p2), %s1187_s14, 1 }
   0x6   : > { %343 = sbr.rel (%p340_p2) target bundleno = 644 (0x284), region = 60 }
   0xb   : > { %v1361_v0 = vmov 1   ;;  %v1362_v1 = vmov 0   ;;  %s1669_s14 = smov (!%p389_p3, %s1187_s14), 1  ;;  %vm598_vm0 = vcmask 1041408   ;;  %v446_v14 = vlaneseq  ;;  %v1269_v29 = vld [vmem:[%s1662_s5] sm:$0xff]  ;;  %v1271_v31 = vld [vmem:[%s1663_s6 + $0x8] sm:$0xff] }
   0xc   : > { %1289 = vset.pattern.permute.xlu1 %v1361_v0  ;;  %1288 = vset.pattern.permute.xlu0 %v1362_v1  ;;  %s1265_s15 = sshll.u32 %s1669_s14, 6  ;;  %s1266_s19 = sshll.u32 %s1669_s14, 3  ;;  %vm498_vm5 = vcmask 130048   ;;  %vm585_vm6 = vcmask 31744   ;;  %v1363_v21 = vmov 0.0   ;;  %vm707_vm7 = vcmask 1043456  }
   0xd   : > { %1290 = vset.pattern.permute.xlu2 %v1362_v1  ;;  %s393_s18 = scalar_lea.vmem %s1657_s0, %s1265_s15  ;;  %s1196_s20 = sshll.u32 %s1669_s14, 1  ;;  %v1476_v18 = vand.u32 127, %v446_v14  ;;  %v640_v30 = vld [vmem:[%s1661_s4] sm:$0xf] }
   0xe   : > { %v1436_v2 = vld [vmem:[%s393_s18] sm:$0xff]  ;;  %v1440_v3 = vld [vmem:[%s393_s18 + $0x10] sm:$0xff]  ;;  %v1443_v4 = vld [vmem:[%s393_s18 + $0x8] sm:$0xff]  ;;  %s398_s23 = scalar_lea.vmem %s1658_s1, %s1266_s19  ;;  %s402_s26 = scalar_lea.vmem %s1659_s2, %s1196_s20  ;;  %v709_v33 = vsel %vm707_vm7, %v640_v30, 0 }
   0xf   : > { %542 = vperm.xlu1 %1289, %v1436_v2   ;;  %449 = vperm.xlu0 %1288, %v1436_v2   ;;  %v1447_v5 = vld [vmem:[%s393_s18 + $0x18] sm:$0xff]  ;;  %v1450_v6 = vld [vmem:[%s393_s18 + $0x20] sm:$0xff]  ;;  %v1455_v7 = vld [vmem:[%s393_s18 + $0x28] sm:$0xff]  ;;  %s405_s20 = scalar_lea.vmem %s1660_s3, %s1669_s14  ;;  %s1606_s11 = scalar_lea.vmem %s1667_s10, %s1265_s15 }
  0x10   : > { %455 = vperm.xlu2 %1290, %v1440_v3   ;;  %v1460_v8 = vld [vmem:[%s393_s18 + $0x30] sm:$0xff]  ;;  %v1464_v9 = vld [vmem:[%s393_s18 + $0x38] sm:$0xff]  ;;  %v1268_v10 = vld [vmem:[%s398_s23] sm:$0xff]  ;;  %vm423_vm7 = vcmp.gt.s32.totalorder %v1447_v5, 0 }
  0x11   : > { %v540_v11 = vld [vmem:[%s402_s26] sm:$0x3]  ;;  %518 = vmatpush.bf16.msra.mxu0 %v1268_v10  ;;  %1274 = vmatpush.bf16.msra.mxu2 %v1268_v10 }
  0x12   : > { %v600_v12 = vsel %vm598_vm0, %v540_v11, 0  ;;  %v1270_v60 = vld [vmem:[%s1663_s6] sm:$0xff] }
  0x13   : > { %609 = vmatpush.bf16.msra.mxu1 %v600_v12  ;;  %1275 = vmatpush.bf16.msra.mxu3 %v600_v12  ;;  %v631_v61 = vld [vmem:[%s405_s20] sm:$0x1] }
  0x14   : > { %v633_v62 = vpack.i.b16 %v631_v61, %v631_v61 }
  0x15   : > { %672 = vmatpush.bf16.msrb.mxu2 %v1269_v29  ;;  %766 = vmatpush.bf16.msrb.mxu0 %v1271_v31 }
  0x16   : > { %v635_v63 = vperm.slane %v633_v62, 0 }
  0x17   : > { %545 = vperm.xlu1 %1289, %v1443_v4   ;;  %452 = vperm.xlu0 %1288, %v1443_v4  }
  0x18   : > { %458 = vperm.xlu2 %1290, %v1447_v5   ;;  %718 = vmatpush.bf16.msrb.mxu3 %v709_v33 }
  0x19   : > { %767 = vmatpush.bf16.msrb.mxu0 %v1270_v60 }
  0x1f   : > { %551 = vperm.xlu1 %1289, %v1447_v5   ;;  %1291 = vset.pattern.permute.xlu0 %v1361_v0 }
  0x20   : > { %548 = vperm.xlu0 %1291, %v1440_v3   ;;  %461 = vperm.xlu2 %1290, %v1450_v6  }
  0x27   : > { %1292 = vset.pattern.permute.xlu1 %v1362_v1 }
  0x28   : > { %464 = vperm.xlu1 %1292, %v1455_v7   ;;  %557 = vperm.xlu0 %1291, %v1455_v7  }
  0x29   : > { %1293 = vset.pattern.permute.xlu2 %v1361_v0 }
  0x2a   : > { %554 = vperm.xlu2 %1293, %v1450_v6  }
  0x30   : > { %467 = vperm.xlu1 %1292, %v1460_v8   ;;  %560 = vperm.xlu0 %1291, %v1460_v8  }
  0x32   : > { %1294 = vset.pattern.permute.xlu2 %v1362_v1 }
  0x33   : > { %470 = vperm.xlu2 %1294, %v1464_v9  }
  0x38   : > { %1295 = vset.pattern.permute.xlu1 %v1361_v0 }
  0x39   : > { %563 = vperm.xlu1 %1295, %v1464_v9  }
  0x6a   : > { %v456_v13 = vpop.permute.xlu2 %455 }
  0x6b   : > { %vm474_vm8 = vcmp.eq.s32.totalorder %v1476_v18, %v456_v13 }
  0x6c   : > { %v482_v36 = vsel %vm474_vm8, 1.0, %v1363_v21  ;;  %vm422_vm8 = vcmp.gt.s32.totalorder %v1440_v3, 0 }
  0x6d   : > { %v1201_v14 = vsel %vm422_vm8, 1.0, %v1363_v21 }
  0x72   : > { %v459_v17 = vpop.permute.xlu2 %458 }
  0x73   : > { %vm475_vm9 = vcmp.eq.s32.totalorder %v1476_v18, %v459_v17 }
  0x74   : > { %v483_v37 = vsel %vm475_vm9, 1.0, %v1363_v21  ;;  %vm420_vm9 = vcmp.gt.s32.totalorder %v1436_v2, 0 }
  0x75   : > { %v489_v43 = vpack.c.bf16 %v483_v37, %v482_v36  ;;  %v1199_v5 = vsel %vm420_vm9, 1.0, %v1363_v21 }
  0x7a   : > { %v462_v28 = vpop.permute.xlu2 %461 }
  0x7b   : > { %vm476_vm13 = vcmp.eq.s32.totalorder %v1476_v18, %v462_v28 }
  0x7c   : > { %v484_v44 = vsel %vm476_vm13, 1.0, %v1363_v21  ;;  %vm426_vm13 = vcmp.gt.s32.totalorder %v1460_v8, 0  ;;  %v1273_v8 = vld [vmem:[%s1665_s8 + $0x8] sm:$0xff] }
  0x7d   : > { %907 = vmatpush.bf16.msrb.mxu1 %v1273_v8 }
  0x81   : > { %v543_v15 = vpop.permute.xlu1 %542  ;;  %v450_v16 = vpop.permute.xlu0 %449 }
  0x82   : > { %vm565_vm1 = vcmp.eq.s32.totalorder %v1476_v18, %v543_v15  ;;  %vm472_vm2 = vcmp.eq.s32.totalorder %v1476_v18, %v450_v16  ;;  %v1202_v15 = vsel %vm423_vm7, 1.0, %v1363_v21 }
  0x83   : > { %v573_v22 = vsel %vm565_vm1, 1.0, %v1363_v21  ;;  %v480_v23 = vsel %vm472_vm2, 1.0, %v1363_v21 }
  0x84   : > { %v555_v35 = vpop.permute.xlu2 %554 }
  0x85   : > { %vm569_vm12 = vcmp.eq.s32.totalorder %v1476_v18, %v555_v35 }
  0x86   : > { %v577_v40 = vsel %vm569_vm12, 1.0, %v1363_v21  ;;  %vm424_vm12 = vcmp.gt.s32.totalorder %v1450_v6, 0 }
  0x89   : > { %v546_v19 = vpop.permute.xlu1 %545  ;;  %v453_v20 = vpop.permute.xlu0 %452 }
  0x8a   : > { %vm566_vm3 = vcmp.eq.s32.totalorder %v1476_v18, %v546_v19  ;;  %vm473_vm4 = vcmp.eq.s32.totalorder %v1476_v18, %v453_v20  ;;  %v1303_v19 = vpack.i.bf16 %v1202_v15, %v1201_v14  ;;  %v1364_v20 = vmov 3  }
  0x8b   : > { %v574_v24 = vsel %vm566_vm3, 1.0, %v1363_v21  ;;  %v481_v25 = vsel %vm473_vm4, 1.0, %v1363_v21  ;;  %vm756_vm4 = vcmask 261120   ;;  %1302 = vset.pattern.permute.xlu0 %v1364_v20  ;;  %1296 = vset.pattern.permute.xlu2 %v1364_v20 }
  0x8c   : > { %v581_v26 = vpack.c.bf16 %v574_v24, %v573_v22  ;;  %v488_v27 = vpack.c.bf16 %v481_v25, %v480_v23  ;;  %1304 = vperm.xlu0 %1302, %v1303_v19   ;;  %1308 = vset.pattern.permute.xlu1 %v1364_v20 }
  0x8d   : > { %v471_v51 = vpop.permute.xlu2 %470 }
  0x8e   : > { %1211 = vmatmul.msk.bf16.vlgmr.msra.gmra.mxu0 %vm498_vm5, %v488_v27  ;;  %1215 = vmatmul.msk.bf16.vlgmr.msra.gmra.mxu1 %vm585_vm6, %v581_v26  ;;  %vm479_vm0 = vcmp.eq.s32.totalorder %v1476_v18, %v471_v51  ;;  %v1203_v27 = vsel %vm424_vm12, 1.0, %v1363_v21 }
  0x8f   : > { %v487_v53 = vsel %vm479_vm0, 1.0, %v1363_v21  ;;  %vm930_vm0 = vcmp.eq.s32.totalorder %v1476_v18, 9 }
  0x91   : > { %v552_v32 = vpop.permute.xlu1 %551 }
  0x92   : > { %v549_v34 = vpop.permute.xlu0 %548  ;;  %vm568_vm10 = vcmp.eq.s32.totalorder %v1476_v18, %v552_v32 }
  0x93   : > { %vm567_vm11 = vcmp.eq.s32.totalorder %v1476_v18, %v549_v34  ;;  %v576_v38 = vsel %vm568_vm10, 1.0, %v1363_v21  ;;  %vm421_vm10 = vcmp.gt.s32.totalorder %v1443_v4, 0 }
  0x94   : > { %v575_v39 = vsel %vm567_vm11, 1.0, %v1363_v21  ;;  %v1200_v3 = vsel %vm421_vm10, 1.0, %v1363_v21  ;;  %vm425_vm11 = vcmp.gt.s32.totalorder %v1455_v7, 0  ;;  %v1205_v7 = vsel %vm426_vm13, 1.0, %v1363_v21 }
  0x95   : > { %v582_v45 = vpack.c.bf16 %v576_v38, %v575_v39  ;;  %v1297_v22 = vpack.i.bf16 %v1200_v3, %v1199_v5  ;;  %v1204_v28 = vsel %vm425_vm11, 1.0, %v1363_v21  ;;  %v1272_v39 = vld [vmem:[%s1665_s8] sm:$0xff] }
  0x96   : > { %908 = vmatpush.bf16.msrb.mxu1 %v1272_v39 }
  0x97   : > { %1298 = vperm.xlu2 %1296, %v1297_v22  }
  0x9a   : > { %v465_v41 = vpop.permute.xlu1 %464  ;;  %v558_v42 = vpop.permute.xlu0 %557 }
  0x9b   : > { %vm477_vm14 = vcmp.eq.s32.totalorder %v1476_v18, %v465_v41  ;;  %vm570_vm15 = vcmp.eq.s32.totalorder %v1476_v18, %v558_v42 }
  0x9c   : > { %v485_v46 = vsel %vm477_vm14, 1.0, %v1363_v21  ;;  %v578_v47 = vsel %vm570_vm15, 1.0, %v1363_v21  ;;  %vm427_vm14 = vcmp.gt.s32.totalorder %v1464_v9, 0  ;;  %v1309_v9 = vpack.i.bf16 %v1204_v28, %v1203_v27 }
  0x9d   : > { %v490_v48 = vpack.c.bf16 %v485_v46, %v484_v44  ;;  %v583_v49 = vpack.c.bf16 %v578_v47, %v577_v40  ;;  %v1206_v6 = vsel %vm427_vm14, 1.0, %v1363_v21  ;;  %v1571_v46 = vld [vmem:[%s1664_s7] ss:$0 sm:$0xff] }
  0x9e   : > { %1212 = vmatmul.msk.bf16.gmra.mxu0 %vm498_vm5, %v489_v43  ;;  %1216 = vmatmul.msk.bf16.gmra.mxu1 %vm585_vm6, %v582_v45  ;;  %v1314_v29 = vpack.i.bf16 %v1206_v6, %v1205_v7 }
  0x9f   : > { %1213 = vmatmul.msk.bf16.vlgmr.msra.gmra.mxu2 %vm498_vm5, %v490_v48  ;;  %1217 = vmatmul.msk.bf16.vlgmr.msra.gmra.mxu3 %vm585_vm6, %v583_v49 }
  0xa0   : > { %1310 = vperm.xlu1 %1308, %v1309_v9   ;;  %1315 = vperm.xlu2 %1296, %v1314_v29  }
  0xa2   : > { %v468_v50 = vpop.permute.xlu1 %467  ;;  %v561_v52 = vpop.permute.xlu0 %560 }
  0xa3   : > { %vm478_vm1 = vcmp.eq.s32.totalorder %v1476_v18, %v468_v50  ;;  %vm571_vm2 = vcmp.eq.s32.totalorder %v1476_v18, %v561_v52 }
  0xa4   : > { %v486_v54 = vsel %vm478_vm1, 1.0, %v1363_v21  ;;  %v579_v57 = vsel %vm571_vm2, 1.0, %v1363_v21 }
  0xa5   : > { %v491_v56 = vpack.c.bf16 %v487_v53, %v486_v54 }
  0xab   : > { %v564_v55 = vpop.permute.xlu1 %563 }
  0xac   : > { %vm572_vm3 = vcmp.eq.s32.totalorder %v1476_v18, %v564_v55 }
  0xad   : > { %v580_v58 = vsel %vm572_vm3, 1.0, %v1363_v21 }
  0xae   : > { %v584_v59 = vpack.c.bf16 %v580_v58, %v579_v57  ;;  %1239 = vmatmul.msk.bf16.vlgmr.msrb.gmra.mxu0 %vm756_vm4, %v635_v63 }
  0xaf   : > { %1214 = vmatmul.msk.bf16.gmra.mxu2 %vm498_vm5, %v491_v56 }
  0xb0   : > { %1218 = vmatmul.msk.bf16.gmra.mxu3 %vm585_vm6, %v584_v59  ;;  %vm694_vm6 = vcmask 64512  }
  0xbe   : > { %1240 = vmatmul.msk.bf16.gmra.mxu0 %vm756_vm4, %v635_v63 }
  0xce   : > { %1241 = vmatmul.msk.bf16.gmra.mxu0 %vm756_vm4, %v635_v63 }
  0xde   : > { %1242 = vmatmul.msk.bf16.gmra.mxu0 %vm756_vm4, %v635_v63 }
  0xf1   : > { %v1299_v52 = vpop.permute.xlu2 %1298 }
  0xf2   : > { %v1301_v55 = vunpack.i.h.bf16 %v1299_v52  ;;  %v1300_v56 = vunpack.i.l.bf16 %v1299_v52 }
  0xfe   : > { %v1305_v15 = vpop.permute.xlu0 %1304 }
  0xff   : > { %v1307_v20 = vunpack.i.h.bf16 %v1305_v15  ;;  %v1306_v5 = vunpack.i.l.bf16 %v1305_v15 }
 0x10b   : > { %v520_v0 = vpop.f32.mrf.mxu0  ;;  %v611_v1 = vpop.f32.mrf.mxu1 }
 0x112   : > { %v1311_v29 = vpop.permute.xlu1 %1310 }
 0x113   : > { %v522_v10 = vpop.f32.mrf.mxu0  ;;  %v613_v11 = vpop.f32.mrf.mxu1 }
 0x114   : > { %v636_v12 = vpack.c.bf16 %v522_v10, %v520_v0  ;;  %v641_v13 = vpack.c.bf16 %v613_v11, %v611_v1 }
 0x116   : > { %1223 = vmatmul.msk.bf16.vlgmr.msrb.gmra.mxu2 %vm498_vm5, %v641_v13  ;;  %1227 = vmatmul.msk.bf16.vlgmr.msrb.gmra.mxu3 %vm694_vm6, %v636_v12 }
 0x11b   : > { %v525_v16 = vpop.f32.mrf.mxu0  ;;  %v616_v17 = vpop.f32.mrf.mxu1 }
 0x122   : > { %v530_v2 = vpop.f32.mrf.mxu2  ;;  %v621_v4 = vpop.f32.mrf.mxu3 }
 0x123   : > { %v527_v23 = vpop.f32.mrf.mxu0  ;;  %v618_v24 = vpop.f32.mrf.mxu1 }
 0x124   : > { %v637_v25 = vpack.c.bf16 %v527_v23, %v525_v16  ;;  %v642_v26 = vpack.c.bf16 %v618_v24, %v616_v17 }
 0x126   : > { %1224 = vmatmul.msk.bf16.gmra.mxu2 %vm498_vm5, %v642_v26  ;;  %1228 = vmatmul.msk.bf16.gmra.mxu3 %vm694_vm6, %v637_v25 }
 0x12a   : > { %v532_v30 = vpop.f32.mrf.mxu2  ;;  %v623_v31 = vpop.f32.mrf.mxu3 }
 0x12b   : > { %v638_v32 = vpack.c.bf16 %v532_v30, %v530_v2  ;;  %v643_v33 = vpack.c.bf16 %v623_v31, %v621_v4  ;;  %v769_v40 = vpop.f32.mrf.mxu0  ;;  %v1313_v31 = vunpack.i.h.bf16 %v1311_v29 }
 0x132   : > { %v535_v21 = vpop.f32.mrf.mxu2 }
 0x133   : > { %v626_v34 = vpop.f32.mrf.mxu3  ;;  %v771_v41 = vpop.f32.mrf.mxu0 }
 0x136   : > { %1225 = vmatmul.msk.bf16.gmra.mxu2 %vm498_vm5, %v643_v33  ;;  %1229 = vmatmul.msk.bf16.gmra.mxu3 %vm694_vm6, %v638_v32  ;;  %v1312_v32 = vunpack.i.l.bf16 %v1311_v29 }
 0x13a   : > { %v537_v35 = vpop.f32.mrf.mxu2 }
 0x13b   : > { %v628_v36 = vpop.f32.mrf.mxu3  ;;  %v639_v37 = vpack.c.bf16 %v537_v35, %v535_v21  ;;  %v774_v47 = vpop.f32.mrf.mxu0 }
 0x13c   : > { %v644_v38 = vpack.c.bf16 %v628_v36, %v626_v34 }
 0x143   : > { %v776_v0 = vpop.f32.mrf.mxu0 }
 0x146   : > { %1226 = vmatmul.msk.bf16.gmra.mxu2 %vm498_vm5, %v644_v38  ;;  %1230 = vmatmul.msk.bf16.gmra.mxu3 %vm694_vm6, %v639_v37 }
 0x14b   : > { %v779_v17 = vpop.f32.mrf.mxu0 }
 0x153   : > { %v781_v28 = vpop.f32.mrf.mxu0 }
 0x15b   : > { %v784_v35 = vpop.f32.mrf.mxu0 }
 0x199   : > { %v674_v42 = vpop.f32.mrf.mxu2  ;;  %v720_v43 = vpop.f32.mrf.mxu3 }
 0x19a   : > { %v721_v44 = vadd.f32 %v720_v43, %v674_v42 }
 0x19c   : > { %v789_v45 = vadd.f32 %v769_v40, %v721_v44 }
 0x19e   : > { %v801_v50 = vadd.f32 %v1571_v46, %v789_v45 }
 0x1a0   : > { %v809_v54 = vmax.f32 %v801_v50, 0.0  ;;  %v1316_v50 = vpop.permute.xlu2 %1315 }
 0x1a1   : > { %v676_v48 = vpop.f32.mrf.mxu2  ;;  %v722_v49 = vpop.f32.mrf.mxu3 }
 0x1a2   : > { %v723_v51 = vadd.f32 %v722_v49, %v676_v48  ;;  %v857_v61 = vmul.f32 %v1300_v56, %v809_v54  ;;  %v786_v48 = vpop.f32.mrf.mxu0  ;;  %v1317_v54 = vunpack.i.l.bf16 %v1316_v50 }
 0x1a4   : > { %v790_v53 = vadd.f32 %v771_v41, %v723_v51 }
 0x1a6   : > { %v802_v57 = vadd.f32 %v1571_v46, %v790_v53  ;;  %v1318_v53 = vunpack.i.h.bf16 %v1316_v50 }
 0x1a8   : > { %v810_v58 = vmax.f32 %v802_v57, 0.0 }
 0x1a9   : > { %v679_v59 = vpop.f32.mrf.mxu2  ;;  %v725_v60 = vpop.f32.mrf.mxu3 }
 0x1aa   : > { %v858_v62 = vmul.f32 %v1301_v55, %v810_v58  ;;  %v726_v63 = vadd.f32 %v725_v60, %v679_v59  ;;  %v1588_v59 = vld [vmem:[%s1666_s9] ss:$0 sm:$0xff] }
 0x1ac   : > { %v865_v1 = vpack.c.bf16 %v858_v62, %v857_v61  ;;  %v791_v10 = vadd.f32 %v774_v47, %v726_v63 }
 0x1ae   : > { %1251 = vmatmul.msk.bf16.vlgmr.msrb.gmra.mxu1 %vm756_vm4, %v865_v1  ;;  %v803_v13 = vadd.f32 %v1571_v46, %v791_v10 }
 0x1b0   : > { %v811_v19 = vmax.f32 %v803_v13, 0.0 }
 0x1b1   : > { %v681_v11 = vpop.f32.mrf.mxu2  ;;  %v727_v12 = vpop.f32.mrf.mxu3 }
 0x1b2   : > { %v728_v14 = vadd.f32 %v727_v12, %v681_v11  ;;  %v859_v23 = vmul.f32 %v1306_v5, %v811_v19 }
 0x1b4   : > { %v792_v16 = vadd.f32 %v776_v0, %v728_v14 }
 0x1b6   : > { %v804_v3 = vadd.f32 %v1571_v46, %v792_v16 }
 0x1b8   : > { %v812_v22 = vmax.f32 %v804_v3, 0.0 }
 0x1b9   : > { %v684_v2 = vpop.f32.mrf.mxu2  ;;  %v730_v4 = vpop.f32.mrf.mxu3 }
 0x1ba   : > { %v731_v24 = vadd.f32 %v730_v4, %v684_v2  ;;  %v860_v25 = vmul.f32 %v1307_v20, %v812_v22 }
 0x1bc   : > { %v866_v26 = vpack.c.bf16 %v860_v25, %v859_v23  ;;  %v793_v27 = vadd.f32 %v779_v17, %v731_v24 }
 0x1be   : > { %1252 = vmatmul.msk.bf16.gmra.mxu1 %vm756_vm4, %v866_v26  ;;  %v805_v8 = vadd.f32 %v1571_v46, %v793_v27 }
 0x1c0   : > { %v813_v33 = vmax.f32 %v805_v8, 0.0 }
 0x1c1   : > { %v686_v7 = vpop.f32.mrf.mxu2  ;;  %v732_v6 = vpop.f32.mrf.mxu3 }
 0x1c2   : > { %v733_v9 = vadd.f32 %v732_v6, %v686_v7  ;;  %v861_v38 = vmul.f32 %v1312_v32, %v813_v33 }
 0x1c4   : > { %v794_v30 = vadd.f32 %v781_v28, %v733_v9 }
 0x1c6   : > { %v806_v21 = vadd.f32 %v1571_v46, %v794_v30 }
 0x1c8   : > { %v814_v34 = vmax.f32 %v806_v21, 0.0 }
 0x1c9   : > { %v689_v36 = vpop.f32.mrf.mxu2  ;;  %v735_v37 = vpop.f32.mrf.mxu3 }
 0x1ca   : > { %v736_v39 = vadd.f32 %v735_v37, %v689_v36  ;;  %v862_v40 = vmul.f32 %v1313_v31, %v814_v34 }
 0x1cc   : > { %v867_v41 = vpack.c.bf16 %v862_v40, %v861_v38  ;;  %v795_v42 = vadd.f32 %v784_v35, %v736_v39 }
 0x1ce   : > { %1253 = vmatmul.msk.bf16.gmra.mxu1 %vm756_vm4, %v867_v41  ;;  %v807_v45 = vadd.f32 %v1571_v46, %v795_v42 }
 0x1d0   : > { %v815_v51 = vmax.f32 %v807_v45, 0.0 }
 0x1d1   : > { %v691_v43 = vpop.f32.mrf.mxu2  ;;  %v737_v44 = vpop.f32.mrf.mxu3 }
 0x1d2   : > { %v738_v47 = vadd.f32 %v737_v44, %v691_v43  ;;  %v863_v56 = vmul.f32 %v1317_v54, %v815_v51 }
 0x1d4   : > { %v796_v49 = vadd.f32 %v786_v48, %v738_v47 }
 0x1d6   : > { %v808_v52 = vadd.f32 %v1571_v46, %v796_v49 }
 0x1d8   : > { %v816_v55 = vmax.f32 %v808_v52, 0.0 }
 0x1da   : > { %v864_v57 = vmul.f32 %v1318_v53, %v816_v55 }
 0x1dc   : > { %v868_v58 = vpack.c.bf16 %v864_v57, %v863_v56 }
 0x1de   : > { %1254 = vmatmul.msk.bf16.gmra.mxu1 %vm756_vm4, %v868_v58 }
 0x22b   : > { %v910_v60 = vpop.f32.mrf.mxu1 }
 0x22c   : > { %v911_v61 = vadd.f32 %v1588_v59, %v910_v60 }
 0x22e   : > { %v1255_v62 = vmul.f32 -1.442695, %v911_v61 }
 0x230   : > { %1321 = vpow2.f32 %v1255_v62 }
 0x233   : > { %v912_v63 = vpop.f32.mrf.mxu1 }
 0x234   : > { %v913_v46 = vadd.f32 %v1588_v59, %v912_v63 }
 0x236   : > { %v1322_v0 = vpop.eup %1321  ;;  %v1256_v1 = vmul.f32 -1.442695, %v913_v46 }
 0x237   : > { %v955_v10 = vadd.f32 1.0, %v1322_v0 }
 0x238   : > { %1323 = vpow2.f32 %v1256_v1 }
 0x239   : > { %1325 = vrcp.f32 %v955_v10  ;;  %v974_v20 = vand.u32 2147483648, %v955_v10  ;;  %v972_v22 = vand.u32 2147483647, %v955_v10  ;;  %vm968_vm15 = vweird.f32 %v955_v10 }
 0x23b   : > { %v915_v11 = vpop.f32.mrf.mxu1  ;;  %v975_v26 = vor.u32 1.1754944e-38, %v974_v20  ;;  %vm973_vm2 = vcmp.eq.f32.partialorder %v972_v22, 8.507059e+37 }
 0x23c   : > { %v1593_v12 = vadd.f32 %v1588_v59, %v915_v11 }
 0x23e   : > { %v1324_v13 = vpop.eup %1323  ;;  %v1257_v14 = vmul.f32 -1.442695, %v1593_v12 }
 0x23f   : > { %v1326_v15 = vpop.eup %1325  ;;  %v956_v16 = vadd.f32 1.0, %v1324_v13 }
 0x240   : > { %v964_v17 = vmul.f32 %v1326_v15, %v955_v10  ;;  %1327 = vpow2.f32 %v1257_v14  ;;  %vm969_vm5 = vweird.f32 %v1326_v15 }
 0x241   : > { %1329 = vrcp.f32 %v956_v16  ;;  %vm970_vm1 = vmor %vm968_vm15, %vm969_vm5  ;;  %v989_v29 = vand.u32 2147483648, %v956_v16  ;;  %v987_v32 = vand.u32 2147483647, %v956_v16  ;;  %vm983_vm4 = vweird.f32 %v956_v16 }
 0x242   : > { %v965_v19 = vsub.f32 1.0, %v964_v17 }
 0x243   : > { %v917_v5 = vpop.f32.mrf.mxu1  ;;  %v990_v37 = vor.u32 1.1754944e-38, %v989_v29  ;;  %vm988_vm7 = vcmp.eq.f32.partialorder %v987_v32, 8.507059e+37 }
 0x244   : > { %v966_v3 = vmul.f32 %v1326_v15, %v965_v19  ;;  %v1597_v2 = vadd.f32 %v1588_v59, %v917_v5 }
 0x246   : > { %v1328_v4 = vpop.eup %1327  ;;  %v967_v23 = vadd.f32 %v1326_v15, %v966_v3  ;;  %v1258_v24 = vmul.f32 -1.442695, %v1597_v2 }
 0x247   : > { %v1330_v25 = vpop.eup %1329  ;;  %v957_v27 = vadd.f32 1.0, %v1328_v4 }
 0x248   : > { %v971_v28 = vsel %vm970_vm1, %v1326_v15, %v967_v23  ;;  %v979_v7 = vmul.f32 %v1330_v25, %v956_v16  ;;  %1331 = vpow2.f32 %v1258_v24  ;;  %vm984_vm3 = vweird.f32 %v1330_v25 }
 0x249   : > { %v976_v6 = vsel %vm973_vm2, %v975_v26, %v971_v28  ;;  %1333 = vrcp.f32 %v957_v27  ;;  %vm985_vm6 = vmor %vm983_vm4, %vm984_vm3  ;;  %v1004_v44 = vand.u32 2147483648, %v957_v27  ;;  %v1002_v48 = vand.u32 2147483647, %v957_v27 }
 0x24a   : > { %v1083_v8 = vsel %vm930_vm0, %v976_v6, %v911_v61  ;;  %v980_v9 = vsub.f32 1.0, %v979_v7  ;;  %vm998_vm9 = vweird.f32 %v957_v27 }
 0x24b   : > { %1091 = vst [vmem:[%s1606_s11] sm:$0xff] %v1083_v8  ;;  %v920_v30 = vpop.f32.mrf.mxu1  ;;  %v1005_v54 = vor.u32 1.1754944e-38, %v1004_v44  ;;  %vm1003_vm11 = vcmp.eq.f32.partialorder %v1002_v48, 8.507059e+37 }
 0x24c   : > { %v981_v31 = vmul.f32 %v1330_v25, %v980_v9  ;;  %v1612_v33 = vadd.f32 %v1588_v59, %v920_v30 }
 0x24e   : > { %v1332_v21 = vpop.eup %1331  ;;  %v982_v34 = vadd.f32 %v1330_v25, %v981_v31  ;;  %v1259_v35 = vmul.f32 -1.442695, %v1612_v33 }
 0x24f   : > { %v1334_v36 = vpop.eup %1333  ;;  %v958_v38 = vadd.f32 1.0, %v1332_v21 }
 0x250   : > { %v986_v39 = vsel %vm985_vm6, %v1330_v25, %v982_v34  ;;  %v994_v40 = vmul.f32 %v1334_v36, %v957_v27  ;;  %1335 = vpow2.f32 %v1259_v35  ;;  %vm999_vm8 = vweird.f32 %v1334_v36 }
 0x251   : > { %v991_v41 = vsel %vm988_vm7, %v990_v37, %v986_v39  ;;  %1337 = vrcp.f32 %v958_v38  ;;  %vm1000_vm10 = vmor %vm998_vm9, %vm999_vm8  ;;  %v1019_v62 = vand.u32 2147483648, %v958_v38  ;;  %v1017_v0 = vand.u32 2147483647, %v958_v38 }
 0x252   : > { %v1084_v42 = vsel %vm930_vm0, %v991_v41, %v913_v46  ;;  %v995_v43 = vsub.f32 1.0, %v994_v40  ;;  %vm1013_vm13 = vweird.f32 %v958_v38 }
 0x253   : > { %1092 = vst [vmem:[%s1606_s11 + $0x8] sm:$0xff] %v1084_v42  ;;  %v922_v45 = vpop.f32.mrf.mxu1  ;;  %v1020_v15 = vor.u32 1.1754944e-38, %v1019_v62  ;;  %vm1018_vm5 = vcmp.eq.f32.partialorder %v1017_v0, 8.507059e+37 }
 0x254   : > { %v996_v47 = vmul.f32 %v1334_v36, %v995_v43  ;;  %v1619_v49 = vadd.f32 %v1588_v59, %v922_v45 }
 0x256   : > { %v1336_v50 = vpop.eup %1335  ;;  %v997_v51 = vadd.f32 %v1334_v36, %v996_v47  ;;  %v1260_v52 = vmul.f32 -1.442695, %v1619_v49 }
 0x257   : > { %v1338_v53 = vpop.eup %1337  ;;  %v959_v55 = vadd.f32 1.0, %v1336_v50 }
 0x258   : > { %v1001_v56 = vsel %vm1000_vm10, %v1334_v36, %v997_v51  ;;  %v1009_v57 = vmul.f32 %v1338_v53, %v958_v38  ;;  %1339 = vpow2.f32 %v1260_v52  ;;  %vm1014_vm12 = vweird.f32 %v1338_v53 }
 0x259   : > { %v1006_v58 = vsel %vm1003_vm11, %v1005_v54, %v1001_v56  ;;  %1341 = vrcp.f32 %v959_v55  ;;  %vm1015_vm14 = vmor %vm1013_vm13, %vm1014_vm12  ;;  %v1034_v3 = vand.u32 2147483648, %v959_v55  ;;  %v1032_v23 = vand.u32 2147483647, %v959_v55 }
 0x25a   : > { %v1085_v60 = vsel %vm930_vm0, %v1006_v58, %v1593_v12  ;;  %v1010_v61 = vsub.f32 1.0, %v1009_v57  ;;  %vm1028_vm1 = vweird.f32 %v959_v55 }
 0x25b   : > { %1093 = vst [vmem:[%s1606_s11 + $0x10] sm:$0xff] %v1085_v60  ;;  %v925_v63 = vpop.f32.mrf.mxu1  ;;  %v1035_v7 = vor.u32 1.1754944e-38, %v1034_v3  ;;  %vm1033_vm3 = vcmp.eq.f32.partialorder %v1032_v23, 8.507059e+37 }
 0x25c   : > { %v1011_v46 = vmul.f32 %v1338_v53, %v1010_v61  ;;  %v1627_v1 = vadd.f32 %v1588_v59, %v925_v63 }
 0x25e   : > { %v1340_v10 = vpop.eup %1339  ;;  %v1012_v11 = vadd.f32 %v1338_v53, %v1011_v46  ;;  %v1261_v13 = vmul.f32 -1.442695, %v1627_v1 }
 0x25f   : > { %v1342_v14 = vpop.eup %1341  ;;  %v960_v12 = vadd.f32 1.0, %v1340_v10 }
 0x260   : > { %v1016_v16 = vsel %vm1015_vm14, %v1338_v53, %v1012_v11  ;;  %v1024_v17 = vmul.f32 %v1342_v14, %v959_v55  ;;  %1343 = vpow2.f32 %v1261_v13  ;;  %vm1029_vm15 = vweird.f32 %v1342_v14 }
 0x261   : > { %v1021_v19 = vsel %vm1018_vm5, %v1020_v15, %v1016_v16  ;;  %1345 = vrcp.f32 %v960_v12  ;;  %vm1030_vm2 = vmor %vm1028_vm1, %vm1029_vm15  ;;  %v1049_v30 = vand.u32 2147483648, %v960_v12  ;;  %v1047_v32 = vand.u32 2147483647, %v960_v12 }
 0x262   : > { %v1086_v20 = vsel %vm930_vm0, %v1021_v19, %v1597_v2  ;;  %v1025_v5 = vsub.f32 1.0, %v1024_v17  ;;  %vm1043_vm6 = vweird.f32 %v960_v12 }
 0x263   : > { %1094 = vst [vmem:[%s1606_s11 + $0x18] sm:$0xff] %v1086_v20  ;;  %v927_v22 = vpop.f32.mrf.mxu1  ;;  %v1050_v36 = vor.u32 1.1754944e-38, %v1049_v30  ;;  %vm1048_vm8 = vcmp.eq.f32.partialorder %v1047_v32, 8.507059e+37 }
 0x264   : > { %v1026_v4 = vmul.f32 %v1342_v14, %v1025_v5  ;;  %v1635_v24 = vadd.f32 %v1588_v59, %v927_v22 }
 0x266   : > { %v1344_v25 = vpop.eup %1343  ;;  %v1027_v26 = vadd.f32 %v1342_v14, %v1026_v4  ;;  %v1262_v27 = vmul.f32 -1.442695, %v1635_v24 }
 0x267   : > { %v1346_v28 = vpop.eup %1345  ;;  %v961_v2 = vadd.f32 1.0, %v1344_v25 }
 0x268   : > { %v1031_v6 = vsel %vm1030_vm2, %v1342_v14, %v1027_v26  ;;  %v1039_v8 = vmul.f32 %v1346_v28, %v960_v12  ;;  %1347 = vpow2.f32 %v1262_v27  ;;  %vm1044_vm4 = vweird.f32 %v1346_v28 }
 0x269   : > { %v1036_v9 = vsel %vm1033_vm3, %v1035_v7, %v1031_v6  ;;  %1349 = vrcp.f32 %v961_v2  ;;  %vm1045_vm7 = vmor %vm1043_vm6, %vm1044_vm4  ;;  %v1064_v42 = vand.u32 2147483648, %v961_v2  ;;  %v1062_v44 = vand.u32 2147483647, %v961_v2 }
 0x26a   : > { %v1087_v59 = vsel %vm930_vm0, %v1036_v9, %v1612_v33  ;;  %v1040_v29 = vsub.f32 1.0, %v1039_v8  ;;  %vm1058_vm10 = vweird.f32 %v961_v2 }
 0x26b   : > { %1095 = vst [vmem:[%s1606_s11 + $0x20] sm:$0xff] %v1087_v59  ;;  %v1065_v48 = vor.u32 1.1754944e-38, %v1064_v42  ;;  %vm1063_vm12 = vcmp.eq.f32.partialorder %v1062_v44, 8.507059e+37 }
 0x26c   : > { %v1041_v31 = vmul.f32 %v1346_v28, %v1040_v29 }
 0x26e   : > { %v1348_v21 = vpop.eup %1347  ;;  %v1042_v34 = vadd.f32 %v1346_v28, %v1041_v31 }
 0x26f   : > { %v1350_v35 = vpop.eup %1349  ;;  %v962_v37 = vadd.f32 1.0, %v1348_v21 }
 0x270   : > { %v1046_v38 = vsel %vm1045_vm7, %v1346_v28, %v1042_v34  ;;  %v1054_v39 = vmul.f32 %v1350_v35, %v961_v2  ;;  %vm1059_vm9 = vweird.f32 %v1350_v35 }
 0x271   : > { %v1051_v40 = vsel %vm1048_vm8, %v1050_v36, %v1046_v38  ;;  %1351 = vrcp.f32 %v962_v37  ;;  %vm1060_vm11 = vmor %vm1058_vm10, %vm1059_vm9  ;;  %v1079_v54 = vand.u32 2147483648, %v962_v37  ;;  %v1077_v56 = vand.u32 2147483647, %v962_v37 }
 0x272   : > { %v1088_v33 = vsel %vm930_vm0, %v1051_v40, %v1619_v49  ;;  %v1055_v41 = vsub.f32 1.0, %v1054_v39  ;;  %vm1073_vm14 = vweird.f32 %v962_v37 }
 0x273   : > { %1096 = vst [vmem:[%s1606_s11 + $0x28] sm:$0xff] %v1088_v33  ;;  %v1080_v58 = vor.u32 1.1754944e-38, %v1079_v54  ;;  %vm1078_vm15 = vcmp.eq.f32.partialorder %v1077_v56, 8.507059e+37 }
 0x274   : > { %v1056_v43 = vmul.f32 %v1350_v35, %v1055_v41 }
 0x276   : > { %v1057_v45 = vadd.f32 %v1350_v35, %v1056_v43 }
 0x277   : > { %v1352_v47 = vpop.eup %1351 }
 0x278   : > { %v1061_v50 = vsel %vm1060_vm11, %v1350_v35, %v1057_v45  ;;  %v1069_v51 = vmul.f32 %v1352_v47, %v962_v37  ;;  %vm1074_vm13 = vweird.f32 %v1352_v47 }
 0x279   : > { %v1066_v52 = vsel %vm1063_vm12, %v1065_v48, %v1061_v50  ;;  %vm1075_vm5 = vmor %vm1073_vm14, %vm1074_vm13 }
 0x27a   : > { %v1089_v49 = vsel %vm930_vm0, %v1066_v52, %v1627_v1  ;;  %v1070_v53 = vsub.f32 1.0, %v1069_v51 }
 0x27b   : > { %1097 = vst [vmem:[%s1606_s11 + $0x30] sm:$0xff] %v1089_v49 }
 0x27c   : > { %v1071_v55 = vmul.f32 %v1352_v47, %v1070_v53 }
 0x27e   : > { %v1072_v57 = vadd.f32 %v1352_v47, %v1071_v55 }
 0x280   : > { %v1076_v60 = vsel %vm1075_vm5, %v1352_v47, %v1072_v57 }
 0x281   : > { %v1081_v61 = vsel %vm1078_vm15, %v1080_v58, %v1076_v60 }
 0x282   : > { %v1090_v62 = vsel %vm930_vm0, %v1081_v61, %v1635_v24 }
 0x283   : > { %1098 = vst [vmem:[%s1606_s11 + $0x38] sm:$0xff] %v1090_v62 }
 0x284 PF: > { %s20_s13 = sadd.s32 1, %s1359_s13  }
 0x285   : > { %p17_p4 = scmp.ge.s32.totalorder %s20_s13, 4  }
 0x287   :  { %19 = sbr.rel (!%p17_p4) target bundleno = 1 (0x1), region = 99 }

</bundles_post_ra>
